<compile_context>
chip_gen: v7x
topology: tpu7x:2x2x1
jax: 0.10.0
libtpu: 0.0.40
codegen_flags: <defaults>
</compile_context>

<pallas_src>
import functools

import jax
import jax.numpy as jnp
import numpy as np
from jax.experimental import pallas as pl
from jax.experimental.pallas import tpu as pltpu

LANE = 128  # packed-output lane width


# ----------------------------- Pallas kernel --------------------------------
def pipnet_kernel(x_ref, wft_ref, bf_ref, wat_ref, ba_ref, wcnn_ref, bc_ref,
                  proto_ref, packed_ref, *, inference: bool):
    # Shapes (all static):
    #   x_ref:      (C_in, N*HW)   channels-first, batch folded into the lane dim
    #   wft_ref:    (F, C_in)      feature-net weight, transposed
    #   bf_ref:     (F, 1)
    #   wat_ref:    (P, F)         add-on weight, transposed
    #   ba_ref:     (P, 1)
    #   wcnn_ref:   (P, NC)        relu(classification weight), precomputed in wrapper
    #   bc_ref:     (1, NC)
    #   proto_ref:  (N, P, HW)     lane-dense proto_features output
    #   packed_ref: (N, LANE)      lanes [0,P)=pooled, [P,P+NC)=out, rest zero padding
    n, p, hw = proto_ref.shape
    nc = bc_ref.shape[1]
    c_in = wft_ref.shape[1]

    x_t = x_ref[...]          # (C_in, N*HW)
    wft = wft_ref[...]        # (F, C_in)
    bf = bf_ref[...]          # (F, 1)
    wat = wat_ref[...]        # (P, F)
    ba = ba_ref[...]          # (P, 1)
    wc_nn = wcnn_ref[...]     # (P, NC)
    bc = bc_ref[...]          # (1, NC)

    # feature_net: 1x1 conv + ReLU as C_in VPU broadcast-FMAs (K=4 would waste the MXU).
    feat_t = wft[:, 0:1] * x_t[0:1, :] + bf                 # (F, N*HW)
    for c in range(1, c_in):
        feat_t = feat_t + wft[:, c:c + 1] * x_t[c:c + 1, :]
    feat_t = jnp.maximum(feat_t, 0.0)

    # add_on: 1x1 conv (MXU, K=F) -> Softmax over prototype (sublane) axis.
    logits_t = jnp.dot(wat, feat_t, preferred_element_type=jnp.float32) + ba  # (P, N*HW)
    m = jnp.max(logits_t, axis=0, keepdims=True)            # (1, N*HW)
    e = jnp.exp(logits_t - m)
    denom = jnp.sum(e, axis=0, keepdims=True)                # (1, N*HW)
    proto_t = e * pl.reciprocal(denom, approx=False)         # (P, N*HW)

    # Per-sample: lane-dense proto store, spatial max-pool, NonNegLinear head.
    pooled_rows = []
    out_rows = []
    for b in range(n):                                        # static unroll (n is tiny)
        proto_b = proto_t[:, b * hw:(b + 1) * hw]             # (P, HW), aligned lane slice
        proto_ref[b] = proto_b.astype(proto_ref.dtype)

        pooled_col = jnp.max(proto_b, axis=-1, keepdims=True)  # (P, 1)
        if inference:
            pooled_col = jnp.where(pooled_col < 0.1, 0.0, pooled_col)

        # NonNegLinear: pooled @ relu(W).T + b, as broadcast * + sublane reduce
        # (avoids a degenerate (1,P)@(P,NC) MXU matmul).
        out_row = jnp.sum(pooled_col * wc_nn, axis=0, keepdims=True) + bc  # (1, NC)

        pooled_rows.append(jnp.transpose(pooled_col))          # (1, P)
        out_rows.append(out_row)

    pooled_all = jnp.concatenate(pooled_rows, axis=0)           # (N, P)
    out_all = jnp.concatenate(out_rows, axis=0)                 # (N, NC)
    pad = jnp.zeros((n, LANE - p - nc), dtype=jnp.float32)
    # One lane-dense (N, 128) store instead of two masked sub-128-lane stores.
    packed_ref[...] = jnp.concatenate([pooled_all, out_all, pad], axis=-1)


# ------------------------------ wrapper --------------------------------------
def pipnet_forward(x_nchw, params, inference=False):
    wf, bf, wa, ba, wc, bc = params
    N, C_in, H, W = x_nchw.shape
    HW = H * W
    F = wf.shape[1]
    P = wa.shape[1]
    NC = wc.shape[1]
    assert P + NC <= LANE, "packed output assumes P + num_classes <= 128"

    # NCHW -> (C_in, N*HW): tiny wrapper-side transpose (8 KiB here); the kernel then
    # sees one wide lane-dense stream with lane index = sample * HW + spatial.
    x_t = jnp.transpose(x_nchw.reshape(N, C_in, HW), (1, 0, 2)).reshape(C_in, N * HW)

    # One-time weight transforms (tiny): transposed weights, column biases, relu(Wc).
    wft = jnp.transpose(wf)            # (F, C_in)
    bf_col = jnp.reshape(bf, (F, 1))   # (F, 1)
    wat = jnp.transpose(wa)            # (P, F)
    ba_col = jnp.reshape(ba, (P, 1))   # (P, 1)
    wc_nn = jnp.maximum(wc, 0.0)       # (P, NC)

    kernel = functools.partial(pipnet_kernel, inference=inference)

    cost = pl.CostEstimate(
        flops=2 * N * HW * (F * C_in + P * F) + 3 * N * HW * P,
        transcendentals=N * HW * P,
        bytes_accessed=4 * (N * C_in * HW + F * C_in + F + P * F + P + P * NC + NC
                            + N * P * HW + N * LANE),
    )

    proto_flat, packed = pl.pallas_call(
        kernel,
        grid=(1,),  # whole batch in one invocation; per-step overhead paid once
        in_specs=[
            pl.BlockSpec((C_in, N * HW), lambda n: (0, 0)),   # x, channels-first, batch-in-lanes
            pl.BlockSpec((F, C_in),      lambda n: (0, 0)),   # feature-net weight^T
            pl.BlockSpec((F, 1),         lambda n: (0, 0)),   # feature-net bias (col)
            pl.BlockSpec((P, F),         lambda n: (0, 0)),   # add-on weight^T
            pl.BlockSpec((P, 1),         lambda n: (0, 0)),   # add-on bias (col)
            pl.BlockSpec((P, NC),        lambda n: (0, 0)),   # relu(classification W)
            pl.BlockSpec((1, NC),        lambda n: (0, 0)),   # classification bias
        ],
        out_specs=[
            pl.BlockSpec((N, P, HW), lambda n: (0, 0, 0)),    # proto_features [N,P,HW]
            pl.BlockSpec((N, LANE),  lambda n: (0, 0)),       # packed pooled+out (lane-dense)
        ],
        out_shape=(
            jax.ShapeDtypeStruct((N, P, HW), jnp.float32),
            jax.ShapeDtypeStruct((N, LANE), jnp.float32),
        ),
        compiler_params=pltpu.CompilerParams(dimension_semantics=("arbitrary",)),
        cost_estimate=cost,
    )(x_t, wft, bf_col, wat, ba_col, wc_nn, bc)

    # [N, P, H*W] -> [N, P, H, W]: pure reshape, already NCHW-ordered (no transpose).
    proto = proto_flat.reshape(N, P, H, W)
    pooled = packed[:, :P]
    out = packed[:, P:P + NC]
    return proto, pooled, out


# ---------------------------- pure-JAX reference -----------------------------
def pipnet_ref(x_nchw, params, inference=False):
    wf, bf, wa, ba, wc, bc = params
    x = jnp.transpose(x_nchw, (0, 2, 3, 1))                             # NHWC
    feat = jax.nn.relu(jnp.einsum("nhwc,cf->nhwf", x, wf) + bf[0])
    logits = jnp.einsum("nhwf,fp->nhwp", feat, wa) + ba[0]
    proto = jax.nn.softmax(logits, axis=-1)
    pooled = jnp.max(proto, axis=(1, 2))
    if inference:
        pooled = jnp.where(pooled < 0.1, 0.0, pooled)                   # clamped pooled is returned
    out = pooled @ jnp.maximum(wc, 0.0) + bc[0]
    return jnp.transpose(proto, (0, 3, 1, 2)), pooled, out


# --------------------------------- main ---------------------------------------
if __name__ == "__main__":
    # small, deterministic config
    N, C_in, H, W = 2, 4, 16, 16
    num_features = 32      # args.num_features
    num_prototypes = 64
    num_classes = 8

    key = jax.random.PRNGKey(0)
    ks = jax.random.split(key, 7)
    wf = jax.random.normal(ks[0], (C_in, num_features), jnp.float32) * 0.3
    bf = jax.random.normal(ks[1], (1, num_features), jnp.float32) * 0.1
    wa = jax.random.normal(ks[2], (num_features, num_prototypes), jnp.float32) * 0.3
    ba = jax.random.normal(ks[3], (1, num_prototypes), jnp.float32) * 0.1
    # NonNegLinear weight (stored as (P, num_classes) == PyTorch weight.T)
    wc = jax.random.normal(ks[4], (num_prototypes, num_classes), jnp.float32) * 0.3
    bc = jax.random.normal(ks[5], (1, num_classes), jnp.float32) * 0.1
    x = jax.random.normal(ks[6], (N, C_in, H, W), jnp.float32)

    params = (wf, bf, wa, ba, wc, bc)

    # training path (inference=False)
    proto, pooled, out = pipnet_forward(x, params, inference=False)
    jax.block_until_ready((proto, pooled, out))
    proto_r, pooled_r, out_r = pipnet_ref(x, params, inference=False)

    np.testing.assert_allclose(np.asarray(proto), np.asarray(proto_r), rtol=1e-4, atol=1e-5)
    np.testing.assert_allclose(np.asarray(pooled), np.asarray(pooled_r), rtol=1e-4, atol=1e-5)
    np.testing.assert_allclose(np.asarray(out), np.asarray(out_r), rtol=1e-4, atol=1e-5)

    # inference path (returns clamped pooled, like the PyTorch forward)
    proto_i, pooled_i, out_i = pipnet_forward(x, params, inference=True)
    jax.block_until_ready((proto_i, pooled_i, out_i))
    proto_i_r, pooled_i_r, out_i_r = pipnet_ref(x, params, inference=True)
    np.testing.assert_allclose(np.asarray(proto_i), np.asarray(proto_i_r), rtol=1e-4, atol=1e-5)
    np.testing.assert_allclose(np.asarray(pooled_i), np.asarray(pooled_i_r), rtol=1e-4, atol=1e-5)
    np.testing.assert_allclose(np.asarray(out_i), np.asarray(out_i_r), rtol=1e-4, atol=1e-5)

    print("KERNEL_OK")
</pallas_src>

<mosaic_0001>
module attributes {stable_mosaic.version = 11 : i64} {
  func.func @pipnet_kernel(%arg0: i32, %arg1: memref<4x512xf32, #tpu.memory_space<vmem>>, %arg2: memref<32x4xf32, #tpu.memory_space<vmem>>, %arg3: memref<32x1xf32, #tpu.memory_space<vmem>>, %arg4: memref<64x32xf32, #tpu.memory_space<vmem>>, %arg5: memref<64x1xf32, #tpu.memory_space<vmem>>, %arg6: memref<64x8xf32, #tpu.memory_space<vmem>>, %arg7: memref<1x8xf32, #tpu.memory_space<vmem>>, %arg8: memref<2x64x256xf32, #tpu.memory_space<vmem>>, %arg9: memref<2x128xf32, #tpu.memory_space<vmem>>) attributes {dimension_semantics = [#tpu.dimension_semantics<arbitrary>], iteration_bounds = array<i64: 1>, scalar_prefetch = 0 : i64, scratch_operands = 0 : i64, tpu.core_type = #tpu.core_type<tc>, window_params = [{pipeline_mode = #tpu.pipeline_mode<synchronous>, transform_indices = @transform_0, window_bounds = array<i64: 4, 512>}, {pipeline_mode = #tpu.pipeline_mode<synchronous>, transform_indices = @transform_1, window_bounds = array<i64: 32, 4>}, {pipeline_mode = #tpu.pipeline_mode<synchronous>, transform_indices = @transform_2, window_bounds = array<i64: 32, 1>}, {pipeline_mode = #tpu.pipeline_mode<synchronous>, transform_indices = @transform_3, window_bounds = array<i64: 64, 32>}, {pipeline_mode = #tpu.pipeline_mode<synchronous>, transform_indices = @transform_4, window_bounds = array<i64: 64, 1>}, {pipeline_mode = #tpu.pipeline_mode<synchronous>, transform_indices = @transform_5, window_bounds = array<i64: 64, 8>}, {pipeline_mode = #tpu.pipeline_mode<synchronous>, transform_indices = @transform_6, window_bounds = array<i64: 1, 8>}, {pipeline_mode = #tpu.pipeline_mode<synchronous>, transform_indices = @transform_7, window_bounds = array<i64: 2, 64, 256>}, {pipeline_mode = #tpu.pipeline_mode<synchronous>, transform_indices = @transform_8, window_bounds = array<i64: 2, 128>}]} {
    %c0 = arith.constant 0 : index
    %c0_0 = arith.constant 0 : index
    %0 = vector.load %arg1[%c0, %c0_0] : memref<4x512xf32, #tpu.memory_space<vmem>>, vector<4x512xf32>
    %c0_1 = arith.constant 0 : index
    %c0_2 = arith.constant 0 : index
    %1 = vector.load %arg2[%c0_1, %c0_2] : memref<32x4xf32, #tpu.memory_space<vmem>>, vector<32x4xf32>
    %c0_3 = arith.constant 0 : index
    %c0_4 = arith.constant 0 : index
    %2 = vector.load %arg3[%c0_3, %c0_4] : memref<32x1xf32, #tpu.memory_space<vmem>>, vector<32x1xf32>
    %c0_5 = arith.constant 0 : index
    %c0_6 = arith.constant 0 : index
    %3 = vector.load %arg4[%c0_5, %c0_6] : memref<64x32xf32, #tpu.memory_space<vmem>>, vector<64x32xf32>
    %c0_7 = arith.constant 0 : index
    %c0_8 = arith.constant 0 : index
    %4 = vector.load %arg5[%c0_7, %c0_8] : memref<64x1xf32, #tpu.memory_space<vmem>>, vector<64x1xf32>
    %c0_9 = arith.constant 0 : index
    %c0_10 = arith.constant 0 : index
    %5 = vector.load %arg6[%c0_9, %c0_10] : memref<64x8xf32, #tpu.memory_space<vmem>>, vector<64x8xf32>
    %c0_11 = arith.constant 0 : index
    %c0_12 = arith.constant 0 : index
    %6 = vector.load %arg7[%c0_11, %c0_12] : memref<1x8xf32, #tpu.memory_space<vmem>>, vector<1x8xf32>
    %7 = vector.extract_strided_slice %1 {offsets = [0, 0], sizes = [32, 1], strides = [1, 1]} : vector<32x4xf32> to vector<32x1xf32>
    %8 = vector.extract_strided_slice %0 {offsets = [0, 0], sizes = [1, 512], strides = [1, 1]} : vector<4x512xf32> to vector<1x512xf32>
    %9 = vector.broadcast %7 : vector<32x1xf32> to vector<32x512xf32>
    %10 = vector.broadcast %8 : vector<1x512xf32> to vector<32x512xf32>
    %11 = arith.mulf %9, %10 : vector<32x512xf32>
    %12 = vector.broadcast %2 : vector<32x1xf32> to vector<32x512xf32>
    %13 = arith.addf %11, %12 : vector<32x512xf32>
    %14 = vector.extract_strided_slice %1 {offsets = [0, 1], sizes = [32, 1], strides = [1, 1]} : vector<32x4xf32> to vector<32x1xf32>
    %15 = vector.extract_strided_slice %0 {offsets = [1, 0], sizes = [1, 512], strides = [1, 1]} : vector<4x512xf32> to vector<1x512xf32>
    %16 = vector.broadcast %14 : vector<32x1xf32> to vector<32x512xf32>
    %17 = vector.broadcast %15 : vector<1x512xf32> to vector<32x512xf32>
    %18 = arith.mulf %16, %17 : vector<32x512xf32>
    %19 = arith.addf %13, %18 : vector<32x512xf32>
    %20 = vector.extract_strided_slice %1 {offsets = [0, 2], sizes = [32, 1], strides = [1, 1]} : vector<32x4xf32> to vector<32x1xf32>
    %21 = vector.extract_strided_slice %0 {offsets = [2, 0], sizes = [1, 512], strides = [1, 1]} : vector<4x512xf32> to vector<1x512xf32>
    %22 = vector.broadcast %20 : vector<32x1xf32> to vector<32x512xf32>
    %23 = vector.broadcast %21 : vector<1x512xf32> to vector<32x512xf32>
    %24 = arith.mulf %22, %23 : vector<32x512xf32>
    %25 = arith.addf %19, %24 : vector<32x512xf32>
    %26 = vector.extract_strided_slice %1 {offsets = [0, 3], sizes = [32, 1], strides = [1, 1]} : vector<32x4xf32> to vector<32x1xf32>
    %27 = vector.extract_strided_slice %0 {offsets = [3, 0], sizes = [1, 512], strides = [1, 1]} : vector<4x512xf32> to vector<1x512xf32>
    %28 = vector.broadcast %26 : vector<32x1xf32> to vector<32x512xf32>
    %29 = vector.broadcast %27 : vector<1x512xf32> to vector<32x512xf32>
    %30 = arith.mulf %28, %29 : vector<32x512xf32>
    %31 = arith.addf %25, %30 : vector<32x512xf32>
    %cst = arith.constant 0.000000e+00 : f32
    %32 = vector.broadcast %cst : f32 to vector<32x512xf32>
    %33 = arith.maximumf %31, %32 : vector<32x512xf32>
    %cst_13 = arith.constant dense<0.000000e+00> : vector<64x512xf32>
    %34 = tpu.matmul %3, %33, %cst_13 {dimension_numbers = #tpu.dot_dimension_numbers<[1], [0], [0], [1], [0, 0, 1, 1], [], []>} : vector<64x32xf32>, vector<32x512xf32>, vector<64x512xf32> -> vector<64x512xf32>
    %35 = vector.broadcast %4 : vector<64x1xf32> to vector<64x512xf32>
    %36 = arith.addf %34, %35 : vector<64x512xf32>
    %cst_14 = arith.constant dense<0xFF800000> : vector<512xf32>
    %37 = vector.multi_reduction <maximumf>, %36, %cst_14 [0] : vector<64x512xf32> to vector<512xf32>
    %38 = vector.shape_cast %37 : vector<512xf32> to vector<1x512xf32>
    %39 = vector.broadcast %38 : vector<1x512xf32> to vector<64x512xf32>
    %40 = arith.subf %36, %39 : vector<64x512xf32>
    %41 = math.exp %40 : vector<64x512xf32>
    %cst_15 = arith.constant dense<0.000000e+00> : vector<512xf32>
    %42 = vector.multi_reduction <add>, %41, %cst_15 [0] : vector<64x512xf32> to vector<512xf32>
    %43 = vector.shape_cast %42 : vector<512xf32> to vector<1x512xf32>
    %44 = tpu.reciprocal %43 : vector<1x512xf32> -> vector<1x512xf32>
    %45 = vector.broadcast %44 : vector<1x512xf32> to vector<64x512xf32>
    %46 = arith.mulf %41, %45 : vector<64x512xf32>
    %47 = vector.extract_strided_slice %46 {offsets = [0, 0], sizes = [64, 256], strides = [1, 1]} : vector<64x512xf32> to vector<64x256xf32>
    %c0_16 = arith.constant 0 : index
    %c0_17 = arith.constant 0 : index
    %c0_18 = arith.constant 0 : index
    %48 = vector.load %arg8[%c0_16, %c0_17, %c0_18] : memref<2x64x256xf32, #tpu.memory_space<vmem>>, vector<1x64x256xf32>
    %49 = vector.shape_cast %48 : vector<1x64x256xf32> to vector<64x256xf32>
    %50 = vector.shape_cast %47 : vector<64x256xf32> to vector<1x64x256xf32>
    tpu.vector_store %arg8[%c0_16, %c0_17, %c0_18], %50 {strides = array<i32>} : memref<2x64x256xf32, #tpu.memory_space<vmem>>, vector<1x64x256xf32>,
    %cst_19 = arith.constant dense<0xFF800000> : vector<64xf32>
    %51 = vector.multi_reduction <maximumf>, %47, %cst_19 [1] : vector<64x256xf32> to vector<64xf32>
    %52 = vector.shape_cast %51 : vector<64xf32> to vector<64x1xf32>
    %53 = vector.broadcast %52 : vector<64x1xf32> to vector<64x8xf32>
    %54 = arith.mulf %53, %5 : vector<64x8xf32>
    %cst_20 = arith.constant dense<0.000000e+00> : vector<8xf32>
    %55 = vector.multi_reduction <add>, %54, %cst_20 [0] : vector<64x8xf32> to vector<8xf32>
    %56 = vector.shape_cast %55 : vector<8xf32> to vector<1x8xf32>
    %57 = arith.addf %56, %6 : vector<1x8xf32>
    %58 = tpu.transpose %52, [1, 0] : vector<64x1xf32> -> vector<1x64xf32>
    %59 = vector.extract_strided_slice %46 {offsets = [0, 256], sizes = [64, 256], strides = [1, 1]} : vector<64x512xf32> to vector<64x256xf32>
    %c1 = arith.constant 1 : index
    %c0_21 = arith.constant 0 : index
    %c0_22 = arith.constant 0 : index
    %60 = vector.load %arg8[%c1, %c0_21, %c0_22] : memref<2x64x256xf32, #tpu.memory_space<vmem>>, vector<1x64x256xf32>
    %61 = vector.shape_cast %60 : vector<1x64x256xf32> to vector<64x256xf32>
    %62 = vector.shape_cast %59 : vector<64x256xf32> to vector<1x64x256xf32>
    tpu.vector_store %arg8[%c1, %c0_21, %c0_22], %62 {strides = array<i32>} : memref<2x64x256xf32, #tpu.memory_space<vmem>>, vector<1x64x256xf32>,
    %cst_23 = arith.constant dense<0xFF800000> : vector<64xf32>
    %63 = vector.multi_reduction <maximumf>, %59, %cst_23 [1] : vector<64x256xf32> to vector<64xf32>
    %64 = vector.shape_cast %63 : vector<64xf32> to vector<64x1xf32>
    %65 = vector.broadcast %64 : vector<64x1xf32> to vector<64x8xf32>
    %66 = arith.mulf %65, %5 : vector<64x8xf32>
    %cst_24 = arith.constant dense<0.000000e+00> : vector<8xf32>
    %67 = vector.multi_reduction <add>, %66, %cst_24 [0] : vector<64x8xf32> to vector<8xf32>
    %68 = vector.shape_cast %67 : vector<8xf32> to vector<1x8xf32>
    %69 = arith.addf %68, %6 : vector<1x8xf32>
    %70 = tpu.transpose %64, [1, 0] : vector<64x1xf32> -> vector<1x64xf32>
    %71 = tpu.concatenate %58, %70 in 0 : vector<1x64xf32>, vector<1x64xf32> -> vector<2x64xf32>
    %72 = tpu.concatenate %57, %69 in 0 : vector<1x8xf32>, vector<1x8xf32> -> vector<2x8xf32>
    %cst_25 = arith.constant 0.000000e+00 : f32
    %73 = vector.broadcast %cst_25 : f32 to vector<2x56xf32>
    %74 = tpu.concatenate %71, %72, %73 in 1 : vector<2x64xf32>, vector<2x8xf32>, vector<2x56xf32> -> vector<2x128xf32>
    %c0_26 = arith.constant 0 : index
    %c0_27 = arith.constant 0 : index
    %75 = vector.load %arg9[%c0_26, %c0_27] : memref<2x128xf32, #tpu.memory_space<vmem>>, vector<2x128xf32>
    tpu.vector_store %arg9[%c0_26, %c0_27], %74 {strides = array<i32>} : memref<2x128xf32, #tpu.memory_space<vmem>>, vector<2x128xf32>,
    return
  }
  func.func @transform_0(%arg0: i32) -> (i32, i32) {
    %c0_i32 = arith.constant 0 : i32
    %c0_i32_0 = arith.constant 0 : i32
    %c0_i32_1 = arith.constant 0 : i32
    return %c0_i32, %c0_i32_0 : i32, i32
  }
  func.func @transform_1(%arg0: i32) -> (i32, i32) {
    %c0_i32 = arith.constant 0 : i32
    %c0_i32_0 = arith.constant 0 : i32
    %c0_i32_1 = arith.constant 0 : i32
    return %c0_i32, %c0_i32_0 : i32, i32
  }
  func.func @transform_2(%arg0: i32) -> (i32, i32) {
    %c0_i32 = arith.constant 0 : i32
    %c0_i32_0 = arith.constant 0 : i32
    %c0_i32_1 = arith.constant 0 : i32
    return %c0_i32, %c0_i32_0 : i32, i32
  }
  func.func @transform_3(%arg0: i32) -> (i32, i32) {
    %c0_i32 = arith.constant 0 : i32
    %c0_i32_0 = arith.constant 0 : i32
    %c0_i32_1 = arith.constant 0 : i32
    return %c0_i32, %c0_i32_0 : i32, i32
  }
  func.func @transform_4(%arg0: i32) -> (i32, i32) {
    %c0_i32 = arith.constant 0 : i32
    %c0_i32_0 = arith.constant 0 : i32
    %c0_i32_1 = arith.constant 0 : i32
    return %c0_i32, %c0_i32_0 : i32, i32
  }
  func.func @transform_5(%arg0: i32) -> (i32, i32) {
    %c0_i32 = arith.constant 0 : i32
    %c0_i32_0 = arith.constant 0 : i32
    %c0_i32_1 = arith.constant 0 : i32
    return %c0_i32, %c0_i32_0 : i32, i32
  }
  func.func @transform_6(%arg0: i32) -> (i32, i32) {
    %c0_i32 = arith.constant 0 : i32
    %c0_i32_0 = arith.constant 0 : i32
    %c0_i32_1 = arith.constant 0 : i32
    return %c0_i32, %c0_i32_0 : i32, i32
  }
  func.func @transform_7(%arg0: i32) -> (i32, i32, i32) {
    %c0_i32 = arith.constant 0 : i32
    %c0_i32_0 = arith.constant 0 : i32
    %c0_i32_1 = arith.constant 0 : i32
    %c0_i32_2 = arith.constant 0 : i32
    return %c0_i32, %c0_i32_0, %c0_i32_1 : i32, i32, i32
  }
  func.func @transform_8(%arg0: i32) -> (i32, i32) {
    %c0_i32 = arith.constant 0 : i32
    %c0_i32_0 = arith.constant 0 : i32
    %c0_i32_1 = arith.constant 0 : i32
    return %c0_i32, %c0_i32_0 : i32, i32
  }
}

</mosaic_0001>

<bundles_post_ra>
// kernel: tpu_custom_call.1
= control target key start
LH: loop header
LB: loop body
LE: loop exit
PB: predicated region body
PF: predicated region fallthrough
CT: control target
= control target key end

     0   :  { %14 = vsyncpa [#allocation3], 0  ;;  %v1400_v2 = vmov 0   ;;  %s2083_s0 = inlined_call_operand.vmem [shape: f32[4,512], index: 0, kind: input, shape index: {}]   ;;  %s2084_s1 = inlined_call_operand.vmem [shape: f32[32,4], index: 1, kind: input, shape index: {}]   ;;  %s2085_s2 = inlined_call_operand.vmem [shape: f32[32,1], index: 2, kind: input, shape index: {}]   ;;  %s2086_s3 = inlined_call_operand.vmem [shape: f32[64,32], index: 3, kind: input, shape index: {}]   ;;  %s2087_s4 = inlined_call_operand.vmem [shape: f32[64,1], index: 4, kind: input, shape index: {}]   ;;  %s2088_s5 = inlined_call_operand.vmem [shape: f32[64,8], index: 5, kind: input, shape index: {}]   ;;  %s2089_s6 = inlined_call_operand.vmem [shape: f32[1,8], index: 6, kind: input, shape index: {}]   ;;  %s2090_s7 = inlined_call_operand.hbm [shape: f32[2,64,256], index: 7, kind: output, shape index: {0}]   ;;  %s2091_s8 = inlined_call_operand.hbm [shape: f32[2,128], index: 8, kind: output, shape index: {1}]  }
   0x1   :  { %v36_v0 = vld [vmem:[%s2085_s2] sm:$0xff]  ;;  %1267 = vset.pattern.permute.xlu1 %v1400_v2  ;;  %1266 = vset.pattern.permute.xlu0 %v1400_v2  ;;  %v37_v3 = vld [vmem:[%s2085_s2 + $0x8] sm:$0xff] }
   0x2   :  { %v32_v1 = vld [vmem:[%s2084_s1] sm:$0xff]  ;;  %141 = vperm.xlu1 %1267, %v36_v0   ;;  %v33_v4 = vld [vmem:[%s2084_s1 + $0x8] sm:$0xff] }
   0x3   :  { %67 = vperm.xlu0 %1266, %v32_v1  }
   0x4   :  { %15 = vsyncpa [#allocation5], 0  ;;  %v35_v5 = vld [vmem:[%s2084_s1 + $0x18] sm:$0xff]  ;;  %v1401_v6 = vmov 1   ;;  %v38_v7 = vld [vmem:[%s2085_s2 + $0x10] sm:$0xff]  ;;  %v1402_v9 = vmov 2   ;;  %v87_v21 = vlaneseq }
   0x5   :  { %v34_v8 = vld [vmem:[%s2084_s1 + $0x10] sm:$0xff]  ;;  %v1403_v10 = vmov 3   ;;  %v39_v11 = vld [vmem:[%s2085_s2 + $0x18] sm:$0xff]  ;;  %v2092_v12 = vmov 0.0   ;;  %v48_v13 = vld [vmem:[%s2087_s4] sm:$0xff]  ;;  %vm483_vm0 = vcmask 261120  }
   0x6   :  { %146 = vperm.xlu1 %1267, %v37_v3   ;;  %572 = vmatprep.mubr.f32.mxu0 %v2092_v12  ;;  %v49_v14 = vld [vmem:[%s2087_s4 + $0x8] sm:$0xff]  ;;  %v50_v15 = vld [vmem:[%s2087_s4 + $0x10] sm:$0xff]  ;;  %v51_v16 = vld [vmem:[%s2087_s4 + $0x18] sm:$0xff]  ;;  %v88_v23 = vshrl.u32 %v87_v21, 7  ;;  %vm1018_vm1 = vcmask 64512   ;;  %s1405_s1 = smov [#allocation2]  }
   0x7   :  { %72 = vperm.xlu0 %1266, %v33_v4   ;;  %685 = vmatprep.mubr.f32.mxu1 %v2092_v12  ;;  %v52_v17 = vld [vmem:[%s2087_s4 + $0x20] sm:$0xff]  ;;  %v53_v18 = vld [vmem:[%s2087_s4 + $0x28] sm:$0xff]  ;;  %v54_v19 = vld [vmem:[%s2087_s4 + $0x30] sm:$0xff]  ;;  %s1199_s2 = sshll.u32 %s1405_s1, 4  ;;  %s1200_s2 = int_to_ptr.vmem [resolvable:$true] %s1199_s2 }
   0x8   :  { %v55_v20 = vld [vmem:[%s2087_s4 + $0x38] sm:$0xff]  ;;  %v89_v25 = vsub.s32 0, %v88_v23  ;;  %v93_v28 = vsub.s32 4, %v88_v23  ;;  %v30_v29 = vld [vmem:[%s2083_s0] sm:$0xff]  ;;  %v193_v30 = vsub.s32 1, %v88_v23  ;;  %v31_v31 = vld [vmem:[%s2083_s0 + $0x8] sm:$0xff]  ;;  %p1357_p1 = scmp.lt.s32.totalorder %s1200_s2, %s1200_s2 }
   0x9   :  { %v197_v32 = vsub.s32 5, %v88_v23  ;;  %v277_v41 = vsub.s32 2, %v88_v23  ;;  %v281_v42 = vsub.s32 6, %v88_v23  ;;  %v361_v45 = vsub.s32 3, %v88_v23  ;;  %s1352_s21 = scalar_lea.vmem %s1200_s2, 4096 }
   0xa   :  { %1268 = vset.pattern.permute.xlu1 %v1401_v6  ;;  %v90_v33 = vrot.slane %v30_v29, %v89_v25  ;;  %v94_v35 = vrot.slane %v30_v29, %v93_v28  ;;  %v98_v36 = vrot.slane %v31_v31, %v89_v25  ;;  %v102_v37 = vrot.slane %v31_v31, %v93_v28  ;;  %p1353_p0 = scmp.ne.s32.totalorder %s1200_s2, %s1352_s21  ;;  %p1358_p2 = scmp.lt.s32.totalorder %s1352_s21, %s1352_s21 }
   0xb   :  { %82 = vperm.xlu0 %1266, %v35_v5   ;;  %180 = vperm.xlu1 %1268, %v33_v4   ;;  %v194_v39 = vrot.slane %v30_v29, %v193_v30  ;;  %v198_v40 = vrot.slane %v30_v29, %v197_v32  ;;  %v202_v43 = vrot.slane %v31_v31, %v193_v30  ;;  %v365_v48 = vsub.s32 7, %v88_v23 }
   0xc   :  { %v206_v44 = vrot.slane %v31_v31, %v197_v32  ;;  %v110_v46 = vrot.slane %v90_v33, %v89_v25  ;;  %v114_v49 = vrot.slane %v94_v35, %v89_v25  ;;  %v118_v50 = vrot.slane %v98_v36, %v89_v25  ;;  %p1359_p3 = por %p1358_p2, %p1357_p1 }
   0xd   :  { %v122_v51 = vrot.slane %v102_v37, %v89_v25  ;;  %v1519_v52 = vrot.slane %v194_v39, %v193_v30  ;;  %v1521_v53 = vrot.slane %v198_v40, %v193_v30  ;;  %v278_v55 = vrot.slane %v30_v29, %v277_v41 }
   0xe   :  { %v282_v56 = vrot.slane %v30_v29, %v281_v42  ;;  %v286_v57 = vrot.slane %v31_v31, %v277_v41  ;;  %v1523_v58 = vrot.slane %v202_v43, %v193_v30  ;;  %v1525_v59 = vrot.slane %v206_v44, %v193_v30  ;;  %p1360_p4 = pnand %p1359_p3, %p1353_p0 }
   0xf   :  { %151 = vperm.xlu0 %1266, %v38_v7   ;;  %1269 = vset.pattern.permute.xlu1 %v1400_v2  ;;  %v290_v60 = vrot.slane %v31_v31, %v281_v42  ;;  %v362_v61 = vrot.slane %v30_v29, %v361_v45  ;;  %v370_v63 = vrot.slane %v31_v31, %v361_v45 }
  0x10   :  { %77 = vperm.xlu1 %1269, %v34_v8   ;;  %v366_v0 = vrot.slane %v30_v29, %v365_v48 }
  0x13   :  { %1271 = vset.pattern.permute.xlu0 %v1401_v6 }
  0x14   :  { %176 = vperm.xlu0 %1271, %v32_v1   ;;  %1270 = vset.pattern.permute.xlu1 %v1402_v9 }
  0x15   :  { %260 = vperm.xlu1 %1270, %v32_v1  }
  0x18   :  { %184 = vperm.xlu0 %1271, %v34_v8  }
  0x19   :  { %264 = vperm.xlu1 %1270, %v33_v4  }
  0x1c   :  { %1275 = vset.pattern.permute.xlu0 %v1403_v10 }
  0x1d   :  { %348 = vperm.xlu0 %1275, %v33_v4   ;;  %1272 = vset.pattern.permute.xlu1 %v1400_v2 }
  0x1e   :  { %156 = vperm.xlu1 %1272, %v39_v11  }
  0x21   :  { %352 = vperm.xlu0 %1275, %v34_v8  }
  0x22   :  { %1273 = vset.pattern.permute.xlu1 %v1401_v6 }
  0x23   :  { %188 = vperm.xlu1 %1273, %v35_v5  }
  0x25   :  { %1278 = vset.pattern.permute.xlu0 %v1400_v2 }
  0x26   :  { %445 = vperm.xlu0 %1278, %v48_v13  }
  0x27   :  { %1274 = vset.pattern.permute.xlu1 %v1403_v10 }
  0x28   :  { %344 = vperm.xlu1 %1274, %v32_v1   ;;  %v374_v1 = vrot.slane %v31_v31, %v365_v48 }
  0x2a   :  { %460 = vperm.xlu0 %1278, %v51_v16   ;;  %v1535_v16 = vrot.slane %v362_v61, %v361_v45 }
  0x2c   :  { %1276 = vset.pattern.permute.xlu1 %v1402_v9  ;;  %v1529_v9 = vrot.slane %v282_v56, %v277_v41 }
  0x2d   :  { %268 = vperm.xlu1 %1276, %v34_v8   ;;  %v1527_v8 = vrot.slane %v278_v55, %v277_v41 }
  0x2e   :  { %470 = vperm.xlu0 %1278, %v53_v18   ;;  %v1538_v18 = vrot.slane %v370_v63, %v361_v45 }
  0x31   :  { %272 = vperm.xlu1 %1276, %v35_v5  }
  0x32   :  { %480 = vperm.xlu0 %1278, %v55_v20   ;;  %v1542_v20 = vrot.slane %v374_v1, %v361_v45 }
  0x35   :  { %1277 = vset.pattern.permute.xlu1 %v1403_v10  ;;  %v1531_v10 = vrot.slane %v286_v57, %v277_v41 }
  0x36   :  { %356 = vperm.xlu1 %1277, %v35_v5  }
  0x3a   :  { %1279 = vset.pattern.permute.xlu1 %v1400_v2 }
  0x3b   :  { %450 = vperm.xlu1 %1279, %v49_v14  }
  0x3f   :  { %455 = vperm.xlu1 %1279, %v50_v15   ;;  %v1533_v15 = vrot.slane %v290_v60, %v277_v41 }
  0x43   :  { %465 = vperm.xlu1 %1279, %v52_v17  }
  0x47   :  { %475 = vperm.xlu1 %1279, %v54_v19   ;;  %v1540_v19 = vrot.slane %v366_v0, %v361_v45 }
  0x81   :  { %v1505_v22 = vpop.permute.xlu1 %141 }
  0x82   :  { %v68_v24 = vpop.permute.xlu0 %67 }
  0x83   :  { %v123_v62 = vmul.f32 %v110_v46, %v68_v24  ;;  %v124_v2 = vmul.f32 %v114_v49, %v68_v24  ;;  %v125_v3 = vmul.f32 %v118_v50, %v68_v24  ;;  %v126_v4 = vmul.f32 %v122_v51, %v68_v24 }
  0x85   :  { %v1507_v26 = vpop.permute.xlu1 %146  ;;  %v159_v17 = vadd.f32 %v1505_v22, %v123_v62  ;;  %v160_v21 = vadd.f32 %v1505_v22, %v124_v2  ;;  %v161_v23 = vadd.f32 %v1505_v22, %v125_v3  ;;  %v162_v24 = vadd.f32 %v1505_v22, %v126_v4 }
  0x86   :  { %v73_v27 = vpop.permute.xlu0 %72 }
  0x87   :  { %v127_v5 = vmul.f32 %v110_v46, %v73_v27  ;;  %v128_v7 = vmul.f32 %v114_v49, %v73_v27  ;;  %v129_v11 = vmul.f32 %v118_v50, %v73_v27  ;;  %v130_v13 = vmul.f32 %v122_v51, %v73_v27 }
  0x89   :  { %v163_v25 = vadd.f32 %v1507_v26, %v127_v5  ;;  %v164_v27 = vadd.f32 %v1507_v26, %v128_v7  ;;  %v165_v31 = vadd.f32 %v1507_v26, %v129_v11  ;;  %v166_v32 = vadd.f32 %v1507_v26, %v130_v13 }
  0x8a   :  { %v1515_v34 = vpop.permute.xlu0 %82  ;;  %v181_v38 = vpop.permute.xlu1 %180 }
  0x8b   :  { %v231_v28 = vmul.f32 %v1519_v52, %v181_v38  ;;  %v232_v29 = vmul.f32 %v1521_v53, %v181_v38  ;;  %v233_v30 = vmul.f32 %v1523_v58, %v181_v38  ;;  %v234_v33 = vmul.f32 %v1525_v59, %v181_v38 }
  0x8c   :  { %v135_v22 = vmul.f32 %v110_v46, %v1515_v34  ;;  %v136_v42 = vmul.f32 %v114_v49, %v1515_v34  ;;  %v137_v43 = vmul.f32 %v118_v50, %v1515_v34  ;;  %v138_v38 = vmul.f32 %v122_v51, %v1515_v34 }
  0x8d   :  { %v247_v26 = vadd.f32 %v231_v28, %v163_v25  ;;  %v249_v48 = vadd.f32 %v233_v30, %v165_v31  ;;  %v248_v55 = vadd.f32 %v232_v29, %v164_v27  ;;  %v250_v60 = vadd.f32 %v234_v33, %v166_v32 }
  0x8e   :  { %v1517_v47 = vpop.permute.xlu0 %151 }
  0x8f   :  { %v78_v54 = vpop.permute.xlu1 %77 }
  0x90   :  { %v131_v35 = vmul.f32 %v110_v46, %v78_v54  ;;  %v132_v39 = vmul.f32 %v114_v49, %v78_v54  ;;  %v133_v40 = vmul.f32 %v118_v50, %v78_v54  ;;  %v134_v56 = vmul.f32 %v122_v51, %v78_v54 }
  0x92   :  { %v167_v46 = vadd.f32 %v1517_v47, %v131_v35  ;;  %v168_v61 = vadd.f32 %v1517_v47, %v132_v39  ;;  %v169_v49 = vadd.f32 %v1517_v47, %v133_v40  ;;  %v170_v27 = vadd.f32 %v1517_v47, %v134_v56 }
  0x93   :  { %v177_v6 = vpop.permute.xlu0 %176 }
  0x94   :  { %v261_v14 = vpop.permute.xlu1 %260  ;;  %v227_v41 = vmul.f32 %v1519_v52, %v177_v6  ;;  %v228_v44 = vmul.f32 %v1521_v53, %v177_v6  ;;  %v229_v45 = vmul.f32 %v1523_v58, %v177_v6  ;;  %v230_v57 = vmul.f32 %v1525_v59, %v177_v6 }
  0x95   :  { %v311_v1 = vmul.f32 %v1527_v8, %v261_v14  ;;  %v312_v34 = vmul.f32 %v1529_v9, %v261_v14  ;;  %v313_v54 = vmul.f32 %v1531_v10, %v261_v14  ;;  %v314_v6 = vmul.f32 %v1533_v15, %v261_v14 }
  0x96   :  { %v243_v50 = vadd.f32 %v227_v41, %v159_v17  ;;  %v245_v0 = vadd.f32 %v229_v45, %v161_v23  ;;  %v244_v51 = vadd.f32 %v228_v44, %v160_v21  ;;  %v246_v13 = vadd.f32 %v230_v57, %v162_v24 }
  0x97   :  { %v185_v36 = vpop.permute.xlu0 %184 }
  0x98   :  { %v265_v37 = vpop.permute.xlu1 %264  ;;  %v235_v7 = vmul.f32 %v1519_v52, %v185_v36  ;;  %v236_v11 = vmul.f32 %v1521_v53, %v185_v36  ;;  %v237_v17 = vmul.f32 %v1523_v58, %v185_v36  ;;  %v238_v23 = vmul.f32 %v1525_v59, %v185_v36 }
  0x99   :  { %v316_v62 = vmul.f32 %v1529_v9, %v265_v37  ;;  %v315_v3 = vmul.f32 %v1527_v8, %v265_v37  ;;  %v317_v4 = vmul.f32 %v1531_v10, %v265_v37  ;;  %v318_v5 = vmul.f32 %v1533_v15, %v265_v37 }
  0x9a   :  { %v328_v14 = vadd.f32 %v312_v34, %v244_v51  ;;  %v251_v35 = vadd.f32 %v235_v7, %v167_v46  ;;  %v330_v39 = vadd.f32 %v314_v6, %v246_v13  ;;  %v327_v36 = vadd.f32 %v311_v1, %v243_v50 }
  0x9b   :  { %v332_v21 = vadd.f32 %v316_v62, %v248_v55  ;;  %v334_v31 = vadd.f32 %v318_v5, %v250_v60  ;;  %v331_v33 = vadd.f32 %v315_v3, %v247_v26  ;;  %v333_v24 = vadd.f32 %v317_v4, %v249_v48 }
  0x9c   :  { %v349_v2 = vpop.permute.xlu0 %348  ;;  %v329_v40 = vadd.f32 %v313_v54, %v245_v0  ;;  %v252_v41 = vadd.f32 %v236_v11, %v168_v61  ;;  %v253_v44 = vadd.f32 %v237_v17, %v169_v49  ;;  %v254_v45 = vadd.f32 %v238_v23, %v170_v27 }
  0x9d   :  { %v157_v63 = vpop.permute.xlu1 %156  ;;  %v400_v25 = vmul.f32 %v1540_v19, %v349_v2  ;;  %v399_v28 = vmul.f32 %v1535_v16, %v349_v2  ;;  %v401_v29 = vmul.f32 %v1538_v18, %v349_v2  ;;  %v402_v32 = vmul.f32 %v1542_v20, %v349_v2 }
  0x9e   :  { %v171_v55 = vadd.f32 %v157_v63, %v135_v22  ;;  %v172_v56 = vadd.f32 %v157_v63, %v136_v42  ;;  %v173_v57 = vadd.f32 %v157_v63, %v137_v43  ;;  %v174_v62 = vadd.f32 %v157_v63, %v138_v38 }
  0x9f   :  { %v416_v47 = vadd.f32 %v400_v25, %v332_v21  ;;  %v418_v34 = vadd.f32 %v402_v32, %v334_v31  ;;  %v415_v2 = vadd.f32 %v399_v28, %v331_v33  ;;  %v417_v26 = vadd.f32 %v401_v29, %v333_v24 }
  0xa0   :  { %v353_v37 = vpop.permute.xlu0 %352 }
  0xa1   :  { %v403_v60 = vmul.f32 %v1535_v16, %v353_v37  ;;  %v404_v49 = vmul.f32 %v1540_v19, %v353_v37  ;;  %v405_v22 = vmul.f32 %v1538_v18, %v353_v37  ;;  %v406_v42 = vmul.f32 %v1542_v20, %v353_v37 }
  0xa2   :  { %v189_v30 = vpop.permute.xlu1 %188  ;;  %v432_v43 = vmax.f32 %v416_v47, 0.0  ;;  %v434_v54 = vmax.f32 %v418_v34, 0.0  ;;  %v431_v3 = vmax.f32 %v415_v2, 0.0  ;;  %v433_v4 = vmax.f32 %v417_v26, 0.0 }
  0xa3   :  { %v239_v51 = vmul.f32 %v1519_v52, %v189_v30  ;;  %v240_v29 = vmul.f32 %v1521_v53, %v189_v30  ;;  %v242_v31 = vmul.f32 %v1525_v59, %v189_v30 }
  0xa5   :  { %v255_v53 = vadd.f32 %v239_v51, %v171_v55  ;;  %v41_v51 = vld [vmem:[%s2086_s3 + $0x8] sm:$0xff] }
  0xa7   :  { %v345_v12 = vpop.permute.xlu1 %344 }
  0xa8   :  { %v395_v48 = vmul.f32 %v1535_v16, %v345_v12  ;;  %v397_v46 = vmul.f32 %v1538_v18, %v345_v12  ;;  %v396_v50 = vmul.f32 %v1540_v19, %v345_v12  ;;  %v398_v61 = vmul.f32 %v1542_v20, %v345_v12 }
  0xaa   :  { %v412_v38 = vadd.f32 %v396_v50, %v328_v14  ;;  %v414_v63 = vadd.f32 %v398_v61, %v330_v39  ;;  %v411_v0 = vadd.f32 %v395_v48, %v327_v36  ;;  %v413_v1 = vadd.f32 %v397_v46, %v329_v40 }
  0xab   :  { %v241_v14 = vmul.f32 %v1523_v58, %v189_v30  ;;  %v256_v58 = vadd.f32 %v240_v29, %v172_v56  ;;  %v258_v30 = vadd.f32 %v242_v31, %v174_v62 }
  0xac   :  { %v269_v5 = vpop.permute.xlu1 %268  ;;  %v428_v6 = vmax.f32 %v412_v38, 0.0  ;;  %v430_v7 = vmax.f32 %v414_v63, 0.0  ;;  %v427_v12 = vmax.f32 %v411_v0, 0.0  ;;  %v429_v11 = vmax.f32 %v413_v1, 0.0 }
  0xad   :  { %v319_v13 = vmul.f32 %v1527_v8, %v269_v5  ;;  %v320_v17 = vmul.f32 %v1529_v9, %v269_v5  ;;  %v321_v23 = vmul.f32 %v1531_v10, %v269_v5  ;;  %v322_v21 = vmul.f32 %v1533_v15, %v269_v5  ;;  %v45_v5 = vld [vmem:[%s2086_s3 + $0x28] sm:$0xff] }
  0xae   :  { %v1240_v25 = vpack.c.bf16 %v432_v43, %v428_v6  ;;  %v1248_v27 = vpack.c.bf16 %v434_v54, %v430_v7  ;;  %v1242_v28 = vpack.c.bf16 %v431_v3, %v427_v12  ;;  %v1250_v52 = vpack.c.bf16 %v433_v4, %v429_v11  ;;  %v42_v54 = vld [vmem:[%s2086_s3 + $0x10] sm:$0xff]  ;;  %v43_v3 = vld [vmem:[%s2086_s3 + $0x18] sm:$0xff]  ;;  %v44_v4 = vld [vmem:[%s2086_s3 + $0x20] sm:$0xff] }
  0xaf   :  { %v335_v32 = vadd.f32 %v319_v13, %v251_v35  ;;  %v336_v33 = vadd.f32 %v320_v17, %v252_v41  ;;  %v337_v24 = vadd.f32 %v321_v23, %v253_v44  ;;  %v338_v37 = vadd.f32 %v322_v21, %v254_v45  ;;  %v46_v6 = vld [vmem:[%s2086_s3 + $0x30] sm:$0xff]  ;;  %v47_v7 = vld [vmem:[%s2086_s3 + $0x38] sm:$0xff]  ;;  %v446_v21 = vpop.permute.xlu0 %445 }
  0xb0   :  { %v273_v39 = vpop.permute.xlu1 %272  ;;  %1241 = vmatprep.subr.bf16.mxu0 %v1240_v25  ;;  %1249 = vmatprep.subr.bf16.mxu1 %v1248_v27  ;;  %v257_v59 = vadd.f32 %v241_v14, %v173_v57 }
  0xb1   :  { %v323_v36 = vmul.f32 %v1527_v8, %v273_v39  ;;  %v324_v40 = vmul.f32 %v1529_v9, %v273_v39  ;;  %v325_v47 = vmul.f32 %v1531_v10, %v273_v39  ;;  %v326_v34 = vmul.f32 %v1533_v15, %v273_v39  ;;  %1243 = vmatpush1.bf16.msra.mxu0 %v1242_v28 }
  0xb2   :  { %1251 = vmatpush1.bf16.msra.mxu1 %v1250_v52  ;;  %v420_v35 = vadd.f32 %v404_v49, %v336_v33  ;;  %v422_v41 = vadd.f32 %v406_v42, %v338_v37  ;;  %v419_v44 = vadd.f32 %v403_v60, %v335_v32  ;;  %v421_v45 = vadd.f32 %v405_v22, %v337_v24 }
  0xb3   :  { %v339_v2 = vadd.f32 %v323_v36, %v255_v53  ;;  %v340_v26 = vadd.f32 %v324_v40, %v256_v58  ;;  %v341_v48 = vadd.f32 %v325_v47, %v257_v59  ;;  %v342_v8 = vadd.f32 %v326_v34, %v258_v30 }
  0xb4   :  { %v436_v61 = vmax.f32 %v420_v35, 0.0  ;;  %v438_v60 = vmax.f32 %v422_v41, 0.0  ;;  %v435_v49 = vmax.f32 %v419_v44, 0.0  ;;  %v437_v22 = vmax.f32 %v421_v45, 0.0 }
  0xb5   :  { %v357_v46 = vpop.permute.xlu1 %356 }
  0xb6   :  { %v407_v9 = vmul.f32 %v1535_v16, %v357_v46  ;;  %v408_v10 = vmul.f32 %v1540_v19, %v357_v46  ;;  %v409_v15 = vmul.f32 %v1538_v18, %v357_v46  ;;  %v410_v55 = vmul.f32 %v1542_v20, %v357_v46  ;;  %v40_v18 = vld [vmem:[%s2086_s3] sm:$0xff] }
  0xb7   :  { %v2094_v20 = vmov 0.0  }
  0xb8   :  { %v424_v56 = vadd.f32 %v408_v10, %v340_v26  ;;  %v426_v57 = vadd.f32 %v410_v55, %v342_v8  ;;  %v423_v62 = vadd.f32 %v407_v9, %v339_v2  ;;  %v425_v50 = vadd.f32 %v409_v15, %v341_v48  ;;  %v461_v8 = vpop.permute.xlu0 %460 }
  0xba   :  { %v440_v42 = vmax.f32 %v424_v56, 0.0  ;;  %v442_v43 = vmax.f32 %v426_v57, 0.0  ;;  %v439_v38 = vmax.f32 %v423_v62, 0.0  ;;  %v441_v63 = vmax.f32 %v425_v50, 0.0  ;;  %v451_v12 = vpop.permute.xlu1 %450 }
  0xbc   :  { %v1244_v0 = vpack.c.bf16 %v440_v42, %v436_v61  ;;  %v1252_v16 = vpack.c.bf16 %v442_v43, %v438_v60  ;;  %v1246_v1 = vpack.c.bf16 %v439_v38, %v435_v49  ;;  %v1254_v19 = vpack.c.bf16 %v441_v63, %v437_v22 }
  0xbe   :  { %1245 = vmatprep.subr.bf16.mxu0 %v1244_v0  ;;  %1253 = vmatprep.subr.bf16.mxu1 %v1252_v16  ;;  %v456_v36 = vpop.permute.xlu1 %455 }
  0xbf   :  { %1247 = vmatpush1.bf16.msra.mxu0 %v1246_v1  ;;  %1255 = vmatpush1.bf16.msra.mxu1 %v1254_v19 }
  0xc2   :  { %1224 = vmatmul.mubr.msk.f32.vlgmr.msra.gmra.mrb[0].mxu0 %vm483_vm0, %v40_v18  ;;  %1232 = vmatmul.mubr.msk.f32.vlgmr.msra.gmra.mrb[0].mxu1 %vm483_vm0, %v40_v18  ;;  %v466_v60 = vpop.permute.xlu1 %465 }
  0xc3   :  { %578 = vmatprep.mubr.f32.mxu0 %v2094_v20  ;;  %691 = vmatprep.mubr.f32.mxu1 %v2094_v20 }
  0xc6   :  { %1225 = vmatmul.mubr.msk.f32.gmra.mrb[2].mxu0 %vm483_vm0, %v41_v51  ;;  %1233 = vmatmul.mubr.msk.f32.gmra.mrb[2].mxu1 %vm483_vm0, %v41_v51  ;;  %v471_v51 = vpop.permute.xlu0 %470 }
  0xc7   :  { %584 = vmatprep.mubr.f32.mxu0 %v2094_v20  ;;  %697 = vmatprep.mubr.f32.mxu1 %v2094_v20 }
  0xca   :  { %1226 = vmatmul.mubr.msk.f32.gmra.mrb[4].mxu0 %vm483_vm0, %v42_v54  ;;  %1234 = vmatmul.mubr.msk.f32.gmra.mrb[4].mxu1 %vm483_vm0, %v42_v54 }
  0xcb   :  { %590 = vmatprep.mubr.f32.mxu0 %v2094_v20  ;;  %703 = vmatprep.mubr.f32.mxu1 %v2094_v20 }
  0xce   :  { %1227 = vmatmul.mubr.msk.f32.gmra.mrb[6].mxu0 %vm483_vm0, %v43_v3  ;;  %1235 = vmatmul.mubr.msk.f32.gmra.mrb[6].mxu1 %vm483_vm0, %v43_v3 }
  0xcf   :  { %596 = vmatprep.mubr.f32.mxu0 %v2094_v20  ;;  %709 = vmatprep.mubr.f32.mxu1 %v2094_v20 }
  0xd2   :  { %1228 = vmatmul.mubr.msk.f32.gmra.mrb[8].mxu0 %vm483_vm0, %v44_v4  ;;  %1236 = vmatmul.mubr.msk.f32.gmra.mrb[8].mxu1 %vm483_vm0, %v44_v4 }
  0xd3   :  { %602 = vmatprep.mubr.f32.mxu0 %v2094_v20  ;;  %715 = vmatprep.mubr.f32.mxu1 %v2094_v20 }
  0xd6   :  { %1229 = vmatmul.mubr.msk.f32.gmra.mrb[10].mxu0 %vm483_vm0, %v45_v5  ;;  %1237 = vmatmul.mubr.msk.f32.gmra.mrb[10].mxu1 %vm483_vm0, %v45_v5 }
  0xd7   :  { %608 = vmatprep.mubr.f32.mxu0 %v2094_v20  ;;  %721 = vmatprep.mubr.f32.mxu1 %v2094_v20 }
  0xda   :  { %1230 = vmatmul.mubr.msk.f32.gmra.mrb[12].mxu0 %vm483_vm0, %v46_v6  ;;  %1238 = vmatmul.mubr.msk.f32.gmra.mrb[12].mxu1 %vm483_vm0, %v46_v6 }
  0xdb   :  { %614 = vmatprep.mubr.f32.mxu0 %v2094_v20  ;;  %727 = vmatprep.mubr.f32.mxu1 %v2094_v20 }
  0xde   :  { %1231 = vmatmul.mubr.msk.f32.gmra.mrb[14].mxu0 %vm483_vm0, %v47_v7  ;;  %1239 = vmatmul.mubr.msk.f32.gmra.mrb[14].mxu1 %vm483_vm0, %v47_v7 }
 0x195   :  { %v687_v11 = vpop.f32.mrb[0].mxu1  ;;  %v574_v13 = vpop.f32.mrb[0].mxu0 }
 0x196   :  { %v689_v17 = vpop.f32.mrb[1].mxu1  ;;  %v576_v23 = vpop.f32.mrb[1].mxu0  ;;  %v1661_v25 = vadd.f32 %v574_v13, %v446_v21  ;;  %v1665_v29 = vadd.f32 %v687_v11, %v446_v21 }
 0x197   :  { %v1663_v27 = vadd.f32 %v576_v23, %v446_v21  ;;  %v1671_v24 = vadd.f32 %v689_v17, %v446_v21 }
 0x199   :  { %v580_v28 = vpop.f32.mrb[2].mxu0  ;;  %v693_v52 = vpop.f32.mrb[2].mxu1 }
 0x19a   :  { %v1667_v14 = vadd.f32 %v580_v28, %v451_v12  ;;  %v1669_v31 = vadd.f32 %v693_v52, %v451_v12  ;;  %v582_v32 = vpop.f32.mrb[3].mxu0  ;;  %v695_v33 = vpop.f32.mrb[3].mxu1 }
 0x19b   :  { %v1673_v37 = vadd.f32 %v582_v32, %v451_v12  ;;  %v1675_v39 = vadd.f32 %v695_v33, %v451_v12  ;;  %v476_v28 = vpop.permute.xlu1 %475 }
 0x19c   :  { %v734_v40 = vmax.f32 %v1661_v25, %v1667_v14  ;;  %v760_v47 = vmax.f32 %v1665_v29, %v1669_v31 }
 0x19d   :  { %v747_v34 = vmax.f32 %v1663_v27, %v1673_v37  ;;  %v773_v53 = vmax.f32 %v1671_v24, %v1675_v39  ;;  %v586_v58 = vpop.f32.mrb[4].mxu0  ;;  %v699_v59 = vpop.f32.mrb[4].mxu1 }
 0x19e   :  { %v1685_v30 = vadd.f32 %v586_v58, %v456_v36  ;;  %v1687_v35 = vadd.f32 %v699_v59, %v456_v36  ;;  %v588_v41 = vpop.f32.mrb[5].mxu0  ;;  %v701_v44 = vpop.f32.mrb[5].mxu1 }
 0x19f   :  { %v1689_v45 = vadd.f32 %v588_v41, %v456_v36  ;;  %v1691_v2 = vadd.f32 %v701_v44, %v456_v36 }
 0x1a0   :  { %v735_v26 = vmax.f32 %v734_v40, %v1685_v30  ;;  %v761_v48 = vmax.f32 %v760_v47, %v1687_v35 }
 0x1a1   :  { %v748_v46 = vmax.f32 %v747_v34, %v1689_v45  ;;  %v774_v9 = vmax.f32 %v773_v53, %v1691_v2  ;;  %v592_v10 = vpop.f32.mrb[6].mxu0  ;;  %v705_v15 = vpop.f32.mrb[6].mxu1 }
 0x1a2   :  { %v1697_v55 = vadd.f32 %v592_v10, %v461_v8  ;;  %v1699_v56 = vadd.f32 %v705_v15, %v461_v8  ;;  %v594_v57 = vpop.f32.mrb[7].mxu0  ;;  %v707_v62 = vpop.f32.mrb[7].mxu1 }
 0x1a3   :  { %v1701_v50 = vadd.f32 %v594_v57, %v461_v8  ;;  %v1703_v61 = vadd.f32 %v707_v62, %v461_v8 }
 0x1a4   :  { %v736_v49 = vmax.f32 %v735_v26, %v1697_v55  ;;  %v762_v22 = vmax.f32 %v761_v48, %v1699_v56  ;;  %v481_v26 = vpop.permute.xlu0 %480 }
 0x1a5   :  { %v749_v42 = vmax.f32 %v748_v46, %v1701_v50  ;;  %v775_v43 = vmax.f32 %v774_v9, %v1703_v61  ;;  %v598_v38 = vpop.f32.mrb[8].mxu0  ;;  %v711_v63 = vpop.f32.mrb[8].mxu1 }
 0x1a6   :  { %v1709_v0 = vadd.f32 %v598_v38, %v466_v60  ;;  %v1711_v16 = vadd.f32 %v711_v63, %v466_v60  ;;  %v600_v1 = vpop.f32.mrb[9].mxu0  ;;  %v713_v19 = vpop.f32.mrb[9].mxu1 }
 0x1a7   :  { %v1713_v18 = vadd.f32 %v600_v1, %v466_v60  ;;  %v1715_v20 = vadd.f32 %v713_v19, %v466_v60 }
 0x1a8   :  { %v737_v54 = vmax.f32 %v736_v49, %v1709_v0  ;;  %v763_v3 = vmax.f32 %v762_v22, %v1711_v16 }
 0x1a9   :  { %v750_v4 = vmax.f32 %v749_v42, %v1713_v18  ;;  %v776_v5 = vmax.f32 %v775_v43, %v1715_v20  ;;  %v604_v6 = vpop.f32.mrb[10].mxu0  ;;  %v717_v7 = vpop.f32.mrb[10].mxu1 }
 0x1aa   :  { %v1721_v12 = vadd.f32 %v604_v6, %v471_v51  ;;  %v1723_v11 = vadd.f32 %v717_v7, %v471_v51  ;;  %v606_v13 = vpop.f32.mrb[11].mxu0  ;;  %v719_v17 = vpop.f32.mrb[11].mxu1 }
 0x1ab   :  { %v1725_v23 = vadd.f32 %v606_v13, %v471_v51  ;;  %v1727_v21 = vadd.f32 %v719_v17, %v471_v51 }
 0x1ac   :  { %v738_v52 = vmax.f32 %v737_v54, %v1721_v12  ;;  %v764_v32 = vmax.f32 %v763_v3, %v1723_v11 }
 0x1ad   :  { %v751_v33 = vmax.f32 %v750_v4, %v1725_v23  ;;  %v777_v36 = vmax.f32 %v776_v5, %v1727_v21  ;;  %v610_v40 = vpop.f32.mrb[12].mxu0  ;;  %v723_v47 = vpop.f32.mrb[12].mxu1 }
 0x1ae   :  { %v1733_v34 = vadd.f32 %v610_v40, %v476_v28  ;;  %v1735_v53 = vadd.f32 %v723_v47, %v476_v28  ;;  %v612_v58 = vpop.f32.mrb[13].mxu0  ;;  %v725_v59 = vpop.f32.mrb[13].mxu1 }
 0x1af   :  { %v1737_v41 = vadd.f32 %v612_v58, %v476_v28  ;;  %v1739_v44 = vadd.f32 %v725_v59, %v476_v28 }
 0x1b0   :  { %v739_v48 = vmax.f32 %v738_v52, %v1733_v34  ;;  %v765_v8 = vmax.f32 %v764_v32, %v1735_v53 }
 0x1b1   :  { %v752_v46 = vmax.f32 %v751_v33, %v1737_v41  ;;  %v778_v9 = vmax.f32 %v777_v36, %v1739_v44  ;;  %v616_v10 = vpop.f32.mrb[14].mxu0  ;;  %v729_v15 = vpop.f32.mrb[14].mxu1 }
 0x1b2   :  { %v617_v57 = vadd.f32 %v616_v10, %v481_v26  ;;  %v1745_v62 = vadd.f32 %v729_v15, %v481_v26  ;;  %v618_v60 = vpop.f32.mrb[15].mxu0  ;;  %v731_v49 = vpop.f32.mrb[15].mxu1 }
 0x1b3   :  { %v1747_v22 = vadd.f32 %v618_v60, %v481_v26  ;;  %v1749_v42 = vadd.f32 %v731_v49, %v481_v26 }
 0x1b4   :  { %v740_v43 = vmax.f32 %v739_v48, %v617_v57  ;;  %v766_v38 = vmax.f32 %v765_v8, %v1745_v62 }
 0x1b5   :  { %v753_v63 = vmax.f32 %v752_v46, %v1747_v22  ;;  %v779_v1 = vmax.f32 %v778_v9, %v1749_v42 }
 0x1b6   :  { %v741_v19 = vrot.slane %v740_v43, 4  ;;  %v767_v51 = vrot.slane %v766_v38, 4 }
 0x1b7   :  { %v754_v54 = vrot.slane %v753_v63, 4  ;;  %v780_v3 = vrot.slane %v779_v1, 4 }
 0x1b8   :  { %v742_v4 = vmax.f32 %v740_v43, %v741_v19  ;;  %v768_v5 = vmax.f32 %v766_v38, %v767_v51 }
 0x1b9   :  { %v755_v6 = vmax.f32 %v753_v63, %v754_v54  ;;  %v781_v7 = vmax.f32 %v779_v1, %v780_v3 }
 0x1ba   :  { %v743_v13 = vrot.slane %v742_v4, 2  ;;  %v769_v17 = vrot.slane %v768_v5, 2 }
 0x1bb   :  { %v756_v28 = vrot.slane %v755_v6, 2  ;;  %v782_v36 = vrot.slane %v781_v7, 2 }
 0x1bc   :  { %v744_v52 = vmax.f32 %v742_v4, %v743_v13  ;;  %v770_v32 = vmax.f32 %v768_v5, %v769_v17 }
 0x1bd   :  { %v757_v33 = vmax.f32 %v755_v6, %v756_v28  ;;  %v783_v48 = vmax.f32 %v781_v7, %v782_v36 }
 0x1be   :  { %v745_v40 = vrot.slane %v744_v52, 1  ;;  %v771_v47 = vrot.slane %v770_v32, 1 }
 0x1bf   :  { %v758_v26 = vrot.slane %v757_v33, 1 }
 0x1c0   :  { %v746_v58 = vmax.f32 %v744_v52, %v745_v40  ;;  %v1754_v59 = vmax.f32 %v770_v32, %v771_v47 }
 0x1c2   :  { %v786_v8 = vsub.f32 %v1661_v25, %v746_v58  ;;  %v790_v46 = vsub.f32 %v1667_v14, %v746_v58  ;;  %v794_v9 = vsub.f32 %v1685_v30, %v746_v58  ;;  %v798_v10 = vsub.f32 %v1697_v55, %v746_v58 }
 0x1c3   :  { %v802_v15 = vsub.f32 %v1709_v0, %v746_v58  ;;  %v806_v60 = vsub.f32 %v1721_v12, %v746_v58  ;;  %v810_v49 = vsub.f32 %v1733_v34, %v746_v58  ;;  %v814_v43 = vsub.f32 %v617_v57, %v746_v58 }
 0x1c4   :  { %v818_v38 = vmul.f32 1.442695, %v786_v8  ;;  %v826_v63 = vmul.f32 1.442695, %v790_v46  ;;  %v788_v1 = vsub.f32 %v1665_v29, %v1754_v59  ;;  %v834_v19 = vmul.f32 1.442695, %v794_v9 }
 0x1c5   :  { %v792_v25 = vsub.f32 %v1669_v31, %v1754_v59  ;;  %v1767_v14 = vmax.f32 %v757_v33, %v758_v26  ;;  %v784_v30 = vrot.slane %v783_v48, 1  ;;  %v842_v55 = vmul.f32 1.442695, %v798_v10 }
 0x1c6   :  { %1280 = vpow2.f32 %v818_v38  ;;  %v850_v0 = vmul.f32 1.442695, %v802_v15  ;;  %v796_v12 = vsub.f32 %v1687_v35, %v1754_v59  ;;  %v800_v34 = vsub.f32 %v1699_v56, %v1754_v59 }
 0x1c7   :  { %1282 = vpow2.f32 %v826_v63  ;;  %v804_v29 = vsub.f32 %v1711_v16, %v1754_v59  ;;  %v808_v57 = vsub.f32 %v1723_v11, %v1754_v59  ;;  %v858_v31 = vmul.f32 1.442695, %v806_v60 }
 0x1c8   :  { %v812_v51 = vsub.f32 %v1735_v53, %v1754_v59  ;;  %v816_v54 = vsub.f32 %v1745_v62, %v1754_v59  ;;  %1284 = vpow2.f32 %v834_v19  ;;  %v866_v3 = vmul.f32 1.442695, %v810_v49 }
 0x1c9   :  { %v1781_v35 = vmax.f32 %v783_v48, %v784_v30  ;;  %1286 = vpow2.f32 %v842_v55  ;;  %v874_v4 = vmul.f32 1.442695, %v814_v43  ;;  %v822_v56 = vmul.f32 1.442695, %v788_v1 }
 0x1ca   :  { %v830_v5 = vmul.f32 1.442695, %v792_v25  ;;  %1288 = vpow2.f32 %v850_v0  ;;  %v838_v16 = vmul.f32 1.442695, %v796_v12  ;;  %v787_v11 = vsub.f32 %v1663_v27, %v1767_v14 }
 0x1cb   :  { %v791_v6 = vsub.f32 %v1673_v37, %v1767_v14  ;;  %1290 = vpow2.f32 %v858_v31  ;;  %v795_v53 = vsub.f32 %v1689_v45, %v1767_v14  ;;  %v799_v62 = vsub.f32 %v1701_v50, %v1767_v14 }
 0x1cc   :  { %v803_v7 = vsub.f32 %v1713_v18, %v1767_v14  ;;  %1292 = vpow2.f32 %v866_v3  ;;  %v807_v13 = vsub.f32 %v1725_v23, %v1767_v14  ;;  %v811_v27 = vsub.f32 %v1737_v41, %v1767_v14 }
 0x1cd   :  { %v815_v37 = vsub.f32 %v1747_v22, %v1767_v14  ;;  %1294 = vpow2.f32 %v822_v56  ;;  %v846_v17 = vmul.f32 1.442695, %v800_v34  ;;  %v854_v50 = vmul.f32 1.442695, %v804_v29 }
 0x1ce   :  { %1296 = vpow2.f32 %v830_v5  ;;  %v862_v28 = vmul.f32 1.442695, %v808_v57  ;;  %v789_v18 = vsub.f32 %v1671_v24, %v1781_v35  ;;  %v793_v23 = vsub.f32 %v1675_v39, %v1781_v35 }
 0x1cf   :  { %1298 = vpow2.f32 %v874_v4  ;;  %v797_v41 = vsub.f32 %v1691_v2, %v1781_v35  ;;  %v801_v22 = vsub.f32 %v1703_v61, %v1781_v35  ;;  %v820_v33 = vmul.f32 1.442695, %v787_v11 }
 0x1d0   :  { %v1799_v45 = vpop.eup %1280  ;;  %1300 = vpow2.f32 %v838_v16  ;;  %v805_v36 = vsub.f32 %v1715_v20, %v1781_v35  ;;  %v809_v24 = vsub.f32 %v1727_v21, %v1781_v35  ;;  %v828_v39 = vmul.f32 1.442695, %v791_v6 }
 0x1d1   :  { %v1803_v52 = vpop.eup %1282  ;;  %1302 = vpow2.f32 %v846_v17  ;;  %v813_v2 = vsub.f32 %v1739_v44, %v1781_v35  ;;  %v817_v61 = vsub.f32 %v1749_v42, %v1781_v35  ;;  %v870_v59 = vmul.f32 1.442695, %v812_v51 }
 0x1d2   :  { %v882_v32 = vadd.f32 %v1803_v52, %v1799_v45  ;;  %v1817_v40 = vpop.eup %1284  ;;  %1304 = vpow2.f32 %v854_v50  ;;  %v836_v26 = vmul.f32 1.442695, %v795_v53  ;;  %v878_v46 = vmul.f32 1.442695, %v816_v54 }
 0x1d3   :  { %v1823_v47 = vpop.eup %1286  ;;  %1306 = vpow2.f32 %v862_v28  ;;  %v844_v10 = vmul.f32 1.442695, %v799_v62  ;;  %v852_v49 = vmul.f32 1.442695, %v803_v7  ;;  %v860_v38 = vmul.f32 1.442695, %v807_v13 }
 0x1d4   :  { %v883_v58 = vadd.f32 %v1817_v40, %v882_v32  ;;  %v1826_v20 = vpop.eup %1288  ;;  %1308 = vpow2.f32 %v820_v33  ;;  %v824_v25 = vmul.f32 1.442695, %v789_v18  ;;  %v832_v30 = vmul.f32 1.442695, %v793_v23 }
 0x1d5   :  { %v1828_v48 = vpop.eup %1290  ;;  %1310 = vpow2.f32 %v828_v39  ;;  %v868_v12 = vmul.f32 1.442695, %v811_v27  ;;  %v840_v29 = vmul.f32 1.442695, %v797_v41  ;;  %v876_v54 = vmul.f32 1.442695, %v815_v37 }
 0x1d6   :  { %v884_v8 = vadd.f32 %v1823_v47, %v883_v58  ;;  %v1831_v9 = vpop.eup %1292  ;;  %1312 = vpow2.f32 %v870_v59  ;;  %v848_v4 = vmul.f32 1.442695, %v801_v22  ;;  %v856_v6 = vmul.f32 1.442695, %v805_v36 }
 0x1d7   :  { %v1833_v15 = vpop.eup %1294  ;;  %1314 = vpow2.f32 %v836_v26  ;;  %v864_v37 = vmul.f32 1.442695, %v809_v24  ;;  %v872_v41 = vmul.f32 1.442695, %v813_v2  ;;  %v880_v24 = vmul.f32 1.442695, %v817_v61 }
 0x1d8   :  { %v885_v60 = vadd.f32 %v1826_v20, %v884_v8  ;;  %v1836_v43 = vpop.eup %1296  ;;  %1316 = vpow2.f32 %v878_v46 }
 0x1d9   :  { %v1838_v63 = vpop.eup %1298  ;;  %v908_v19 = vadd.f32 %v1836_v43, %v1833_v15  ;;  %1318 = vpow2.f32 %v844_v10 }
 0x1da   :  { %v886_v1 = vadd.f32 %v1828_v48, %v885_v60  ;;  %v1843_v14 = vpop.eup %1300  ;;  %1320 = vpow2.f32 %v852_v49 }
 0x1db   :  { %v909_v0 = vadd.f32 %v1843_v14, %v908_v19  ;;  %v1847_v34 = vpop.eup %1302  ;;  %1322 = vpow2.f32 %v860_v38 }
 0x1dc   :  { %v887_v55 = vadd.f32 %v1831_v9, %v886_v1  ;;  %v1849_v57 = vpop.eup %1304  ;;  %1324 = vpow2.f32 %v824_v25 }
 0x1dd   :  { %v910_v51 = vadd.f32 %v1847_v34, %v909_v0  ;;  %v1853_v3 = vpop.eup %1306  ;;  %1326 = vpow2.f32 %v832_v30 }
 0x1de   :  { %v888_v31 = vadd.f32 %v1838_v63, %v887_v55  ;;  %v1855_v56 = vpop.eup %1308  ;;  %1328 = vpow2.f32 %v868_v12 }
 0x1df   :  { %v911_v16 = vadd.f32 %v1849_v57, %v910_v51  ;;  %v1858_v11 = vpop.eup %1310  ;;  %1330 = vpow2.f32 %v840_v29 }
 0x1e0   :  { %v889_v5 = vrot.slane %v888_v31, 4  ;;  %v1860_v53 = vpop.eup %1312  ;;  %1332 = vpow2.f32 %v876_v54  ;;  %v895_v13 = vadd.f32 %v1858_v11, %v1855_v56 }
 0x1e1   :  { %v912_v7 = vadd.f32 %v1853_v3, %v911_v16  ;;  %v1865_v27 = vpop.eup %1314  ;;  %1334 = vpow2.f32 %v848_v4 }
 0x1e2   :  { %v890_v62 = vadd.f32 %v889_v5, %v888_v31  ;;  %v1870_v17 = vpop.eup %1316  ;;  %v896_v18 = vadd.f32 %v1865_v27, %v895_v13  ;;  %1336 = vpow2.f32 %v856_v6 }
 0x1e3   :  { %v913_v28 = vadd.f32 %v1860_v53, %v912_v7  ;;  %v1874_v23 = vpop.eup %1318  ;;  %1338 = vpow2.f32 %v864_v37 }
 0x1e4   :  { %v891_v50 = vrot.slane %v890_v62, 2  ;;  %v1879_v22 = vpop.eup %1320  ;;  %v897_v33 = vadd.f32 %v1874_v23, %v896_v18  ;;  %1340 = vpow2.f32 %v872_v41 }
 0x1e5   :  { %v914_v21 = vadd.f32 %v1870_v17, %v913_v28  ;;  %v1883_v36 = vpop.eup %1322  ;;  %1342 = vpow2.f32 %v880_v24 }
 0x1e6   :  { %v892_v32 = vadd.f32 %v891_v50, %v890_v62  ;;  %v1888_v39 = vpop.eup %1324  ;;  %v898_v44 = vadd.f32 %v1879_v22, %v897_v33 }
 0x1e7   :  { %v915_v59 = vrot.slane %v914_v21, 4  ;;  %v1891_v2 = vpop.eup %1326 }
 0x1e8   :  { %v893_v58 = vrot.slane %v892_v32, 1  ;;  %v1893_v26 = vpop.eup %1328  ;;  %v899_v10 = vadd.f32 %v1883_v36, %v898_v44  ;;  %v921_v60 = vadd.f32 %v1891_v2, %v1888_v39 }
 0x1e9   :  { %v916_v46 = vadd.f32 %v915_v59, %v914_v21  ;;  %v1898_v42 = vpop.eup %1330 }
 0x1ea   :  { %v894_v8 = vadd.f32 %v893_v58, %v892_v32  ;;  %v1900_v35 = vpop.eup %1332  ;;  %v900_v49 = vadd.f32 %v1893_v26, %v899_v10  ;;  %v922_v38 = vadd.f32 %v1898_v42, %v921_v60 }
 0x1eb   :  { %v917_v61 = vrot.slane %v916_v46, 2  ;;  %v1904_v1 = vpop.eup %1334 }
 0x1ec   :  { %1344 = vrcp.f32 %v894_v8  ;;  %v901_v25 = vadd.f32 %v1900_v35, %v900_v49  ;;  %v923_v30 = vadd.f32 %v1904_v1, %v922_v38  ;;  %v1908_v55 = vpop.eup %1336 }
 0x1ed   :  { %v918_v19 = vadd.f32 %v917_v61, %v916_v46  ;;  %v1911_v31 = vpop.eup %1338 }
 0x1ee   :  { %v902_v12 = vrot.slane %v901_v25, 4  ;;  %v924_v29 = vadd.f32 %v1908_v55, %v923_v30  ;;  %v1914_v5 = vpop.eup %1340 }
 0x1ef   :  { %v919_v0 = vrot.slane %v918_v19, 1  ;;  %v1917_v62 = vpop.eup %1342 }
 0x1f0   :  { %v903_v54 = vadd.f32 %v902_v12, %v901_v25  ;;  %v925_v4 = vadd.f32 %v1911_v31, %v924_v29 }
 0x1f1   :  { %v920_v51 = vadd.f32 %v919_v0, %v918_v19 }
 0x1f2   :  { %v904_v16 = vrot.slane %v903_v54, 2  ;;  %v926_v6 = vadd.f32 %v1914_v5, %v925_v4 }
 0x1f3   :  { %1346 = vrcp.f32 %v920_v51 }
 0x1f4   :  { %v905_v13 = vadd.f32 %v904_v16, %v903_v54  ;;  %v927_v37 = vadd.f32 %v1917_v62, %v926_v6 }
 0x1f6   :  { %v1345_v7 = vpop.eup %1344  ;;  %v906_v32 = vrot.slane %v905_v13, 1  ;;  %v928_v21 = vrot.slane %v927_v37, 4 }
 0x1f7   :  { %v1921_v50 = vmul.f32 %v1345_v7, %v1803_v52  ;;  %v1924_v28 = vmul.f32 %v1345_v7, %v1799_v45  ;;  %v1927_v18 = vmul.f32 %v1345_v7, %v1817_v40  ;;  %v1930_v41 = vmul.f32 %v1345_v7, %v1823_v47 }
 0x1f8   :  { %v1933_v33 = vmul.f32 %v1345_v7, %v1826_v20  ;;  %v1936_v24 = vmul.f32 %v1345_v7, %v1828_v48  ;;  %v1943_v45 = vmul.f32 %v1345_v7, %v1831_v9  ;;  %v1946_v52 = vmul.f32 %v1345_v7, %v1838_v63 }
 0x1f9   :  { %972 = vst [vmem:[#allocation2 + $0x10] sm:$0xff] %v1921_v50  ;;  %970 = vst [vmem:[#allocation2] sm:$0xff] %v1924_v28  ;;  %v907_v40 = vadd.f32 %v906_v32, %v905_v13  ;;  %v929_v47 = vadd.f32 %v928_v21, %v927_v37  ;;  %v56_v32 = vld [vmem:[%s2088_s5] sm:$0xff] }
 0x1fa   :  { %974 = vst [vmem:[#allocation2 + $0x20] sm:$0xff] %v1927_v18  ;;  %976 = vst [vmem:[#allocation2 + $0x30] sm:$0xff] %v1930_v41 }
 0x1fb   :  { %978 = vst [vmem:[#allocation2 + $0x40] sm:$0xff] %v1933_v33  ;;  %980 = vst [vmem:[#allocation2 + $0x50] sm:$0xff] %v1936_v24  ;;  %1348 = vrcp.f32 %v907_v40  ;;  %v930_v20 = vrot.slane %v929_v47, 2  ;;  %v59_v40 = vld [vmem:[%s2088_s5 + $0x18] sm:$0xff] }
 0x1fc   :  { %982 = vst [vmem:[#allocation2 + $0x60] sm:$0xff] %v1943_v45  ;;  %984 = vst [vmem:[#allocation2 + $0x70] sm:$0xff] %v1946_v52 }
 0x1fd   :  { %v1347_v48 = vpop.eup %1346  ;;  %v931_v58 = vadd.f32 %v930_v20, %v929_v47 }
 0x1fe   :  { %v1953_v9 = vmul.f32 %v1347_v48, %v1836_v43  ;;  %v1956_v63 = vmul.f32 %v1347_v48, %v1833_v15  ;;  %v1959_v59 = vmul.f32 %v1347_v48, %v1843_v14  ;;  %v1962_v44 = vmul.f32 %v1347_v48, %v1847_v34 }
 0x1ff   :  { %v932_v8 = vrot.slane %v931_v58, 1  ;;  %v1965_v46 = vmul.f32 %v1347_v48, %v1849_v57  ;;  %v1968_v10 = vmul.f32 %v1347_v48, %v1853_v3  ;;  %v1971_v60 = vmul.f32 %v1347_v48, %v1860_v53 }
 0x200   :  { %1076 = vst [vmem:[#allocation2 + $0x90] sm:$0xff] %v1953_v9  ;;  %1074 = vst [vmem:[#allocation2 + $0x80] sm:$0xff] %v1956_v63  ;;  %v1978_v15 = vmul.f32 %v1347_v48, %v1870_v17 }
 0x201   :  { %1078 = vst [vmem:[#allocation2 + $0xa0] sm:$0xff] %v1959_v59  ;;  %1080 = vst [vmem:[#allocation2 + $0xb0] sm:$0xff] %v1962_v44  ;;  %v933_v43 = vadd.f32 %v932_v8, %v931_v58  ;;  %v60_v58 = vld [vmem:[%s2088_s5 + $0x20] sm:$0xff]  ;;  %v61_v8 = vld [vmem:[%s2088_s5 + $0x28] sm:$0xff] }
 0x202   :  { %1082 = vst [vmem:[#allocation2 + $0xc0] sm:$0xff] %v1965_v46  ;;  %1084 = vst [vmem:[#allocation2 + $0xd0] sm:$0xff] %v1968_v10 }
 0x203   :  { %1086 = vst [vmem:[#allocation2 + $0xe0] sm:$0xff] %v1971_v60  ;;  %1088 = vst [vmem:[#allocation2 + $0xf0] sm:$0xff] %v1978_v15  ;;  %1350 = vrcp.f32 %v933_v43 }
 0x205   :  { %v1349_v14 = vpop.eup %1348 }
 0x206   :  { %v943_v34 = vmul.f32 %v1349_v14, %v1858_v11  ;;  %v939_v57 = vmul.f32 %v1349_v14, %v1855_v56  ;;  %v947_v3 = vmul.f32 %v1349_v14, %v1865_v27  ;;  %v951_v53 = vmul.f32 %v1349_v14, %v1874_v23 }
 0x207   :  { %v955_v17 = vmul.f32 %v1349_v14, %v1879_v22  ;;  %v959_v61 = vmul.f32 %v1349_v14, %v1883_v36  ;;  %v963_v49 = vmul.f32 %v1349_v14, %v1893_v26  ;;  %v967_v38 = vmul.f32 %v1349_v14, %v1900_v35  ;;  %v62_v14 = vld [vmem:[%s2088_s5 + $0x30] sm:$0xff] }
 0x208   :  { %973 = vst [vmem:[#allocation2 + $0x18] sm:$0xff] %v943_v34  ;;  %v989_v19 = vmax.f32 %v1921_v50, %v943_v34  ;;  %971 = vst [vmem:[#allocation2 + $0x8] sm:$0xff] %v939_v57  ;;  %v986_v11 = vmax.f32 %v1924_v28, %v939_v57  ;;  %v992_v56 = vmax.f32 %v1927_v18, %v947_v3 }
 0x209   :  { %975 = vst [vmem:[#allocation2 + $0x28] sm:$0xff] %v947_v3  ;;  %977 = vst [vmem:[#allocation2 + $0x38] sm:$0xff] %v951_v53  ;;  %v995_v27 = vmax.f32 %v1930_v41, %v951_v53  ;;  %v998_v23 = vmax.f32 %v1933_v33, %v955_v17  ;;  %v1001_v22 = vmax.f32 %v1936_v24, %v959_v61  ;;  %v57_v41 = vld [vmem:[%s2088_s5 + $0x8] sm:$0xff]  ;;  %v58_v24 = vld [vmem:[%s2088_s5 + $0x10] sm:$0xff] }
 0x20a   :  { %979 = vst [vmem:[#allocation2 + $0x48] sm:$0xff] %v955_v17  ;;  %981 = vst [vmem:[#allocation2 + $0x58] sm:$0xff] %v959_v61  ;;  %v1004_v36 = vmax.f32 %v1943_v45, %v963_v49  ;;  %v1007_v26 = vmax.f32 %v1946_v52, %v967_v38 }
 0x20b   :  { %983 = vst [vmem:[#allocation2 + $0x68] sm:$0xff] %v963_v49  ;;  %985 = vst [vmem:[#allocation2 + $0x78] sm:$0xff] %v967_v38  ;;  %v63_v49 = vld [vmem:[%s2088_s5 + $0x38] sm:$0xff] }
 0x20d   :  { %v1351_v35 = vpop.eup %1350 }
 0x20e   :  { %v945_v25 = vmul.f32 %v1351_v35, %v1891_v2  ;;  %v941_v30 = vmul.f32 %v1351_v35, %v1888_v39  ;;  %v949_v0 = vmul.f32 %v1351_v35, %v1898_v42  ;;  %v953_v12 = vmul.f32 %v1351_v35, %v1904_v1 }
 0x20f   :  { %v957_v29 = vmul.f32 %v1351_v35, %v1908_v55  ;;  %v961_v51 = vmul.f32 %v1351_v35, %v1911_v31  ;;  %v965_v54 = vmul.f32 %v1351_v35, %v1914_v5  ;;  %v969_v4 = vmul.f32 %v1351_v35, %v1917_v62 }
 0x210   :  { %1077 = vst [vmem:[#allocation2 + $0x98] sm:$0xff] %v945_v25  ;;  %v1093_v16 = vmax.f32 %v1953_v9, %v945_v25  ;;  %1075 = vst [vmem:[#allocation2 + $0x88] sm:$0xff] %v941_v30  ;;  %v1090_v2 = vmax.f32 %v1956_v63, %v941_v30  ;;  %v1096_v39 = vmax.f32 %v1959_v59, %v949_v0 }
 0x211   :  { %1079 = vst [vmem:[#allocation2 + $0xa8] sm:$0xff] %v949_v0  ;;  %1081 = vst [vmem:[#allocation2 + $0xb8] sm:$0xff] %v953_v12  ;;  %v1099_v42 = vmax.f32 %v1962_v44, %v953_v12  ;;  %v1102_v1 = vmax.f32 %v1965_v46, %v957_v29  ;;  %v1105_v55 = vmax.f32 %v1968_v10, %v961_v51 }
 0x212   :  { %1083 = vst [vmem:[#allocation2 + $0xc8] sm:$0xff] %v957_v29  ;;  %1085 = vst [vmem:[#allocation2 + $0xd8] sm:$0xff] %v961_v51  ;;  %v1108_v31 = vmax.f32 %v1971_v60, %v965_v54  ;;  %v1111_v5 = vmax.f32 %v1978_v15, %v969_v4  ;;  %1094 = vmax.xlane.f32.xlu0 %v1093_v16  ;;  %1091 = vmax.xlane.f32.xlu1 %v1090_v2 }
 0x213   :  { %1087 = vst [vmem:[#allocation2 + $0xe8] sm:$0xff] %v965_v54  ;;  %1089 = vst [vmem:[#allocation2 + $0xf8] sm:$0xff] %v969_v4 }
 0x216   :  { %990 = vmax.xlane.f32.xlu1 %v989_v19  ;;  %987 = vmax.xlane.f32.xlu0 %v986_v11 }
 0x21a   :  { %993 = vmax.xlane.f32.xlu1 %v992_v56  ;;  %1097 = vmax.xlane.f32.xlu0 %v1096_v39 }
 0x21e   :  { %996 = vmax.xlane.f32.xlu1 %v995_v27  ;;  %1100 = vmax.xlane.f32.xlu0 %v1099_v42 }
 0x222   :  { %999 = vmax.xlane.f32.xlu1 %v998_v23  ;;  %1103 = vmax.xlane.f32.xlu0 %v1102_v1 }
 0x226   :  { %1002 = vmax.xlane.f32.xlu1 %v1001_v22  ;;  %1106 = vmax.xlane.f32.xlu0 %v1105_v55 }
 0x22a   :  { %1005 = vmax.xlane.f32.xlu1 %v1004_v36  ;;  %1109 = vmax.xlane.f32.xlu0 %v1108_v31 }
 0x22e   :  { %1008 = vmax.xlane.f32.xlu1 %v1007_v26  ;;  %1112 = vmax.xlane.f32.xlu0 %v1111_v5 }
 0x29f   :  { %v1095_v6 = vpop.xlane.xlu0 %1094  ;;  %v1092_v62 = vpop.xlane.xlu1 %1091 }
 0x2a0   :  { %1144 = vxpose.xlu1.b32.start [1/8] (short) (narrow) %v1092_v62, 8  ;;  %v1115_v45 = vmul.f32 %v1095_v6, %v57_v41  ;;  %v1114_v52 = vmul.f32 %v1092_v62, %v56_v32 }
 0x2a2   :  { %v1123_v9 = vsel %vm1018_vm1, %v1115_v45, 0.0  ;;  %v1122_v63 = vsel %vm1018_vm1, %v1114_v52, 0.0 }
 0x2a3   :  { %v991_v7 = vpop.xlane.xlu1 %990  ;;  %v988_v13 = vpop.xlane.xlu0 %987  ;;  %v1124_v43 = vadd.f32 %v1123_v9, %v1122_v63 }
 0x2a4   :  { %1145 = vxpose.xlu1.b32.cont [2/8] (short) (narrow) %v1095_v6, 8  ;;  %1041 = vxpose.xlu0.b32.start [1/8] (short) (narrow) %v988_v13, 8  ;;  %v1011_v44 = vmul.f32 %v991_v7, %v57_v41  ;;  %v1010_v46 = vmul.f32 %v988_v13, %v56_v32 }
 0x2a6   :  { %v1020_v17 = vsel %vm1018_vm1, %v1011_v44, 0.0  ;;  %v1019_v38 = vsel %vm1018_vm1, %v1010_v46, 0.0 }
 0x2a7   :  { %v994_v37 = vpop.xlane.xlu1 %993  ;;  %v1098_v50 = vpop.xlane.xlu0 %1097  ;;  %v1021_v25 = vadd.f32 %v1020_v17, %v1019_v38 }
 0x2a8   :  { %1042 = vxpose.xlu0.b32.cont [2/8] (short) (narrow) %v991_v7, 8  ;;  %1146 = vxpose.xlu1.b32.cont [3/8] (short) (narrow) %v1098_v50, 8  ;;  %v1116_v47 = vmul.f32 %v1098_v50, %v58_v24  ;;  %v1012_v34 = vmul.f32 %v994_v37, %v58_v24 }
 0x2aa   :  { %v1125_v10 = vsel %vm1018_vm1, %v1116_v47, 0.0  ;;  %v1022_v22 = vsel %vm1018_vm1, %v1012_v34, 0.0  ;;  %v64_v47 = vld [vmem:[%s2089_s6] sm:$0x1] }
 0x2ab   :  { %v997_v28 = vpop.xlane.xlu1 %996  ;;  %v1101_v18 = vpop.xlane.xlu0 %1100  ;;  %v1126_v61 = vadd.f32 %v1125_v10, %v1124_v43  ;;  %v1023_v54 = vadd.f32 %v1022_v22, %v1021_v25 }
 0x2ac   :  { %1043 = vxpose.xlu0.b32.cont [3/8] (short) (narrow) %v994_v37, 8  ;;  %1147 = vxpose.xlu1.b32.cont [4/8] (short) (narrow) %v1101_v18, 8  ;;  %v1117_v59 = vmul.f32 %v1101_v18, %v59_v40  ;;  %v1013_v19 = vmul.f32 %v997_v28, %v59_v40 }
 0x2ae   :  { %v1127_v57 = vsel %vm1018_vm1, %v1117_v59, 0.0  ;;  %v1024_v0 = vsel %vm1018_vm1, %v1013_v19, 0.0 }
 0x2af   :  { %v1000_v21 = vpop.xlane.xlu1 %999  ;;  %v1104_v33 = vpop.xlane.xlu0 %1103  ;;  %v1128_v23 = vadd.f32 %v1127_v57, %v1126_v61  ;;  %v1025_v42 = vadd.f32 %v1024_v0, %v1023_v54 }
 0x2b0   :  { %1044 = vxpose.xlu0.b32.cont [4/8] (short) (narrow) %v997_v28, 8  ;;  %1148 = vxpose.xlu1.b32.cont [5/8] (short) (narrow) %v1104_v33, 8  ;;  %v1118_v60 = vmul.f32 %v1104_v33, %v60_v58  ;;  %v1014_v36 = vmul.f32 %v1000_v21, %v60_v58 }
 0x2b2   :  { %v1129_v11 = vsel %vm1018_vm1, %v1118_v60, 0.0  ;;  %v1026_v16 = vsel %vm1018_vm1, %v1014_v36, 0.0 }
 0x2b3   :  { %v1003_v20 = vpop.xlane.xlu1 %1002  ;;  %v1107_v48 = vpop.xlane.xlu0 %1106  ;;  %v1130_v30 = vadd.f32 %v1129_v11, %v1128_v23  ;;  %v1027_v5 = vadd.f32 %v1026_v16, %v1025_v42 }
 0x2b4   :  { %1045 = vxpose.xlu0.b32.cont [5/8] (short) (narrow) %v1000_v21, 8  ;;  %1149 = vxpose.xlu1.b32.cont [6/8] (short) (narrow) %v1107_v48, 8  ;;  %v1119_v3 = vmul.f32 %v1107_v48, %v61_v8  ;;  %v1015_v12 = vmul.f32 %v1003_v20, %v61_v8 }
 0x2b6   :  { %v1131_v26 = vsel %vm1018_vm1, %v1119_v3, 0.0  ;;  %v1028_v55 = vsel %vm1018_vm1, %v1015_v12, 0.0 }
 0x2b7   :  { %v1110_v15 = vpop.xlane.xlu0 %1109  ;;  %v1006_v53 = vpop.xlane.xlu1 %1005  ;;  %v1132_v4 = vadd.f32 %v1131_v26, %v1130_v30  ;;  %v1029_v7 = vadd.f32 %v1028_v55, %v1027_v5 }
 0x2b8   :  { %1046 = vxpose.xlu0.b32.cont [6/8] (short) (narrow) %v1003_v20, 8  ;;  %1150 = vxpose.xlu1.b32.cont [7/8] (short) (narrow) %v1110_v15, 8  ;;  %v1120_v56 = vmul.f32 %v1110_v15, %v62_v14  ;;  %v1016_v2 = vmul.f32 %v1006_v53, %v62_v14 }
 0x2ba   :  { %v1133_v29 = vsel %vm1018_vm1, %v1120_v56, 0.0  ;;  %v1030_v62 = vsel %vm1018_vm1, %v1016_v2, 0.0 }
 0x2bb   :  { %v1113_v27 = vpop.xlane.xlu0 %1112  ;;  %v1009_v51 = vpop.xlane.xlu1 %1008  ;;  %v1134_v1 = vadd.f32 %v1133_v29, %v1132_v4  ;;  %v1031_v37 = vadd.f32 %v1030_v62, %v1029_v7 }
 0x2bc   :  { %1047 = vxpose.xlu0.b32.cont [7/8] (short) (narrow) %v1006_v53, 8  ;;  %1151 = vxpose.xlu1.b32.end [8/8] (short) (narrow) %v1113_v27, 8  ;;  %v1121_v35 = vmul.f32 %v1113_v27, %v63_v49  ;;  %v1017_v31 = vmul.f32 %v1009_v51, %v63_v49 }
 0x2be   :  { %v1135_v39 = vsel %vm1018_vm1, %v1121_v35, 0.0  ;;  %v1032_v13 = vsel %vm1018_vm1, %v1017_v31, 0.0 }
 0x2bf   :  { %v1136_v6 = vadd.f32 %v1135_v39, %v1134_v1  ;;  %v1033_v28 = vadd.f32 %v1032_v13, %v1031_v37 }
 0x2c0   :  { %1048 = vxpose.xlu0.b32.end [8/8] (short) (narrow) %v1009_v51, 8 }
 0x2c1   :  { %v1137_v50 = vrot.slane %v1136_v6, 4  ;;  %v1034_v41 = vrot.slane %v1033_v28, 4 }
 0x2c3   :  { %v1138_v18 = vadd.f32 %v1137_v50, %v1136_v6  ;;  %v1035_v21 = vadd.f32 %v1034_v41, %v1033_v28 }
 0x2c5   :  { %v1139_v32 = vrot.slane %v1138_v18, 2  ;;  %v1036_v24 = vrot.slane %v1035_v21, 2 }
 0x2c7   :  { %v1140_v33 = vadd.f32 %v1139_v32, %v1138_v18  ;;  %v1037_v52 = vadd.f32 %v1036_v24, %v1035_v21 }
 0x2c9   :  { %v1141_v45 = vrot.slane %v1140_v33, 1  ;;  %v1038_v20 = vrot.slane %v1037_v52, 1 }
 0x2cb   :  { %v1142_v40 = vadd.f32 %v1141_v45, %v1140_v33 }
 0x2cc   :  { %1363 = shalt.err (!%p1360_p4)
}
 0x2cd   :  { %s1364_s24 = scalar_lea.hbm %s2090_s7, 4096 }
 0x2ce   :  { %p1365_p5 = scmp.ne.s32.totalorder %s2090_s7, %s1364_s24  ;;  %p1368_p6 = scmp.lt.u32.totalorder %s1364_s24, %s2090_s7 }
 0x2d0   :  { %p1370_p7 = pnand %p1368_p6, %p1365_p5 }
 0x2d2   :  { %1373 = shalt.err (!%p1370_p7)
}
 0x2d3   :  { %s1406_s28 = smov 256   ;;  %s1407_s3 = smov 16   ;;  %v1143_v48 = vadd.f32 %v1142_v40, %v64_v47  ;;  %v1039_v58 = vadd.f32 %v1038_v20, %v1037_v52  ;;  %vm1179_vm2 = vcmask 1040384   ;;  %vm1189_vm3 = vcmask 523264  }
 0x2d4   :  { %1205 = dma.vmem_to_hbm [thread:$0]  %s1200_s2, 4096, %s2090_s7, [#allocation3], %s1406_s28, %s1406_s28, %s1407_s3   ;;  %vm1191_vm4 = vcmask 588800  }
 0x2d5   :  { %v1182_v9 = vrot.slane %v1143_v48, 7  ;;  %v1040_v63 = vadd.f32 %v1039_v58, %v64_v47  ;;  %s1408_s9 = smov 64   ;;  %s1409_s10 = smov [#allocation4]  }
 0x2d6   :  { %s1212_s11 = sshll.u32 %s1409_s10, 4  ;;  %s1213_s11 = int_to_ptr.vmem [resolvable:$true] %s1212_s11 }
 0x2d7   :  { %v1184_v59 = vsel %vm1179_vm2, %v1040_v63, %v1182_v9  ;;  %s1374_s7 = scalar_lea.vmem %s1213_s11, 32  ;;  %p1379_p9 = scmp.lt.s32.totalorder %s1213_s11, %s1213_s11 }
 0x2d8   :  { %p1375_p8 = scmp.ne.s32.totalorder %s1213_s11, %s1374_s7  ;;  %p1380_p10 = scmp.lt.s32.totalorder %s1374_s7, %s1374_s7 }
 0x2da   :  { %p1381_p11 = por %p1380_p10, %p1379_p9 }
 0x2dc   :  { %p1382_p12 = pnand %p1381_p11, %p1375_p8 }
 0x2e9   :  { %1186 = vrot.lane.b32.xlu0 %v1184_v59, %s1408_s9 }
 0x320   :  { %v1160_v44 = vpop.trf.xlu1 }
 0x321   :  { %v1177_v46 = vrot.slane %v1160_v44, 7 }
 0x324   :  { %v1057_v8 = vpop.trf.xlu0 }
 0x325   :  { %v1180_v10 = vsel %vm1179_vm2, %v1057_v8, %v1177_v46 }
 0x35b   :  { %v1187_v60 = vpop.permute.xlu0 %1186 }
 0x35c   :  { %v1190_v15 = vsel %vm1189_vm3, %v1180_v10, %v1187_v60 }
 0x35d   :  { %v1192_v43 = vsel %vm1191_vm4, %v1190_v15, 0.0 }
 0x35e   :  { %1193 = vst [vmem:[#allocation4] sm:$0x3] %v1192_v43 }
 0x35f   :  { %1385 = shalt.err (!%p1382_p12)
}
 0x360   :  { %s1386_s14 = scalar_lea.hbm %s2091_s8, 32 }
 0x361   :  { %p1387_p13 = scmp.ne.s32.totalorder %s2091_s8, %s1386_s14  ;;  %p1390_p0 = scmp.lt.u32.totalorder %s1386_s14, %s2091_s8 }
 0x363   :  { %p1392_p1 = pnand %p1390_p0, %p1387_p13 }
 0x365   :  { %1395 = shalt.err (!%p1392_p1)
}
 0x366   :  { %1215 = dma.vmem_to_hbm [thread:$0]  %s1213_s11, 32, %s2091_s8, [#allocation5]  }
 0x367   :  { %1396 = dma.done.wait [#allocation3], 4096  }
 0x368   :  { %1397 = vsyncadd [#allocation3], 4294963200 }
 0x369   :  { %1398 = dma.done.wait [#allocation5], 32  }
 0x36a   :  { %1399 = vsyncadd [#allocation5], 4294967264 }
 0x36b   :  { %1222 = vsyncpa [#allocation3], 1 }
 0x36c   :  { %1223 = vsyncpa [#allocation5], 1 }

</bundles_post_ra>
